<compile_context>
chip_gen: v7x
topology: tpu7x:2x2x1
jax: 0.10.0
libtpu: 0.0.40
codegen_flags: <defaults>
</compile_context>

<pallas_src>
import functools

import jax
import jax.numpy as jnp
from jax import lax
from jax.experimental import pallas as pl
from jax.experimental.pallas import tpu as pltpu

SINKHORN_ITERATIONS = 100   # nn.Module __init__ default
SINKHORN_EPSILON = 0.1
BIN_SCORE_VALUE = 0.5

LANE = 128
SUBLANE = 8


def _round_up(x, m):
    return ((x + m - 1) // m) * m


def _recip(s):
    """Reciprocal of a positive sum: EUP approx + one Newton step (~f32 eps).

    The clamp keeps padded (all-zero) rows/cols finite; they are always
    multiplied back against the exact zeros of K0, so padding never produces
    inf/NaN and padded output entries stay exactly 0.
    """
    s = jnp.maximum(s, 1e-30)
    r = pl.reciprocal(s, approx=True)
    return r * (2.0 - s * r)


def _masked_exp_scores(a, b, z, inv_eps, n_rows_valid, n_cols_valid):
    """exp((a @ b.T) * inv_eps) with bin row/col set to exp(z*inv_eps), padding = 0."""
    score = lax.dot_general(a, b, (((1,), (1,)), ((), ())),
                            preferred_element_type=jnp.float32)
    rows, cols = score.shape
    r_idx = lax.broadcasted_iota(jnp.int32, (rows, cols), 0)
    c_idx = lax.broadcasted_iota(jnp.int32, (rows, cols), 1)
    valid = jnp.logical_and(r_idx < n_rows_valid, c_idx < n_cols_valid)
    is_bin = jnp.logical_or(r_idx == n_rows_valid - 1, c_idx == n_cols_valid - 1)
    return jnp.where(valid, jnp.exp(jnp.where(is_bin, z, score) * inv_eps), 0.0)


def _matching_kernel(z_ref, q_ref, r_ref, paug_ref, k0t_ref, *,
                     epsilon, iterations, m_valid, n_valid, unroll):
    """Build K0 / K0^T once, run scaling-vector Sinkhorn, write diag(u) K0 diag(v).

    z_ref    : (1,)      SMEM learnable bin score
    q_ref    : (Mp, D)   VMEM (rows >= m_valid-1 are zero padding)
    r_ref    : (Np, D)   VMEM (rows >= n_valid-1 are zero padding)
    paug_ref : (Mp, Np)  VMEM output; holds K0 (read-only) during the loop,
               overwritten once with the final matrix. [:m_valid, :n_valid] is
               P_augmented.
    k0t_ref  : (Np, Mp)  VMEM scratch holding K0^T (read-only during the loop).
    """
    np_cols = r_ref.shape[0]
    z = z_ref[0]
    inv_eps = 1.0 / epsilon

    q = q_ref[...]
    r = r_ref[...]

    # K0 (Mp, Np): built once, read-only for the whole Sinkhorn loop.
    paug_ref[...] = _masked_exp_scores(q, r, z, inv_eps, m_valid, n_valid)

    if iterations <= 0:          # static; reference loop degenerates to K0
        return

    # K0^T (Np, Mp): rebuilt from the swapped matmul (MXU + EUP) instead of a
    # big XLU transpose, so both loop matvecs are plain NN MXU matmuls.
    k0t_ref[...] = _masked_exp_scores(r, q, z, inv_eps, n_valid, m_valid)

    # Scaling-vector Sinkhorn.  v is broadcast across 128 lanes so both matvecs
    # run on the (otherwise idle) MXU; only small tiles are live across iters.
    #   u_t = 1 / (K0 @ v_{t-1}),   v_t = 1 / (K0^T @ u_t),   v_0 = 1
    def one_step(v):
        u = _recip(jnp.dot(paug_ref[...], v, preferred_element_type=jnp.float32))
        return _recip(jnp.dot(k0t_ref[...], u, preferred_element_type=jnp.float32))

    n_iter = iterations - 1                 # last iteration fused into finalize
    n_main, rem = divmod(n_iter, unroll)

    def body(_, v):
        for _u in range(unroll):            # manual unroll: LLO scheduler visibility
            v = one_step(v)
        return v

    v = jnp.ones((np_cols, LANE), jnp.float32)
    v = lax.fori_loop(0, n_main, body, v)
    for _u in range(rem):                   # static remainder
        v = one_step(v)

    # Final iteration: row step on the MXU, column step fused into the single
    # materialization of diag(u) K0 diag(v) (one full-matrix pass in total).
    k0 = paug_ref[...]
    u_col = _recip(jnp.dot(k0, v, preferred_element_type=jnp.float32)[:, 0:1])
    k1 = k0 * u_col                                           # row scaling
    v_row = _recip(jnp.sum(k1, axis=0, keepdims=True))        # column step (once)
    paug_ref[...] = k1 * v_row


def _vmem_limit_bytes(mp_rows, np_cols, d):
    """Generation-aware VMEM budget (single-buffered, grid-less call)."""
    def phys(rows, cols):
        return _round_up(rows, SUBLANE) * _round_up(cols, LANE) * 4

    need = (phys(mp_rows, np_cols)          # paug / K0
            + phys(np_cols, mp_rows)        # K0^T scratch
            + phys(np_cols, LANE)           # v carry (spill headroom)
            + phys(mp_rows, d) + phys(np_cols, d)   # descriptors
            + (4 << 20))                    # compiler internal scratch slack
    try:
        cap = pltpu.get_tpu_info().vmem_capacity_bytes
    except Exception:                       # info query unavailable -> safe default
        cap = 64 << 20
    budget = (cap * 7) // 8                 # ~112 MiB v5e/v6e, ~56 MiB v7x
    return int(min(max(need, 32 << 20), budget))


def simple_object_matching(d_M_q, d_N_r, z_value=BIN_SCORE_VALUE,
                           epsilon=SINKHORN_EPSILON,
                           iterations=SINKHORN_ITERATIONS,
                           unroll=4):
    """Pallas equivalent of SimpleObjectMatchingModule.forward. Returns (P, P_augmented)."""
    M, D = d_M_q.shape
    N, _ = d_N_r.shape
    if M == 0 or N == 0:
        return (jnp.empty((M, N), jnp.float32),
                jnp.empty((M + 1, N + 1), jnp.float32))

    # Pad to sublane/lane-aligned augmented shape: lane-dense output store and
    # unmasked full-vreg work inside the kernel.
    Mp = _round_up(M + 1, SUBLANE)
    Np = _round_up(N + 1, LANE)
    q_pad = jnp.pad(d_M_q.astype(jnp.float32), ((0, Mp - M), (0, 0)))
    r_pad = jnp.pad(d_N_r.astype(jnp.float32), ((0, Np - N), (0, 0)))
    z_arr = jnp.array([z_value], dtype=jnp.float32)

    kernel = functools.partial(
        _matching_kernel, epsilon=epsilon, iterations=iterations,
        m_valid=M + 1, n_valid=N + 1, unroll=unroll)

    p_aug_padded = pl.pallas_call(
        kernel,
        out_shape=jax.ShapeDtypeStruct((Mp, Np), jnp.float32),
        in_specs=[
            pl.BlockSpec(memory_space=pltpu.SMEM),   # z (scalar parameter)
            pl.BlockSpec(memory_space=pltpu.VMEM),   # q padded
            pl.BlockSpec(memory_space=pltpu.VMEM),   # r padded
        ],
        out_specs=pl.BlockSpec(memory_space=pltpu.VMEM),
        scratch_shapes=[pltpu.VMEM((Np, Mp), jnp.float32)],   # K0^T
        compiler_params=pltpu.CompilerParams(
            vmem_limit_bytes=_vmem_limit_bytes(Mp, Np, D)),
    )(z_arr, q_pad, r_pad)

    p_aug = p_aug_padded[:M + 1, :N + 1]
    return p_aug[:M, :N], p_aug


def _reference(d_M_q, d_N_r, z_value, epsilon, iterations):
    """Pure-JAX reference mirroring the PyTorch forward, for validation."""
    M, N = d_M_q.shape[0], d_N_r.shape[0]
    score = d_M_q @ d_N_r.T
    s_aug = jnp.full((M + 1, N + 1), z_value, dtype=jnp.float32)
    s_aug = s_aug.at[:M, :N].set(score)
    k = jnp.exp(s_aug / epsilon)
    for _ in range(iterations):
        k = k / k.sum(axis=1, keepdims=True)
        k = k / k.sum(axis=0, keepdims=True)
    return k[:M, :N], k


if __name__ == "__main__":
    key = jax.random.PRNGKey(0)
    k1, k2 = jax.random.split(key)
    M, N, D = 8, 8, 32

    # Unit-norm descriptors (keeps exp(S/eps) finite, like real feature descriptors).
    d_M_q = jax.random.normal(k1, (M, D), dtype=jnp.float32)
    d_M_q = d_M_q / jnp.linalg.norm(d_M_q, axis=-1, keepdims=True)
    d_N_r = jax.random.normal(k2, (N, D), dtype=jnp.float32)
    d_N_r = d_N_r / jnp.linalg.norm(d_N_r, axis=-1, keepdims=True)

    P, P_aug = simple_object_matching(d_M_q, d_N_r)
    jax.block_until_ready((P, P_aug))

    P_ref, P_aug_ref = _reference(d_M_q, d_N_r, BIN_SCORE_VALUE,
                                  SINKHORN_EPSILON, SINKHORN_ITERATIONS)
    assert jnp.allclose(P_aug, P_aug_ref, rtol=2e-4, atol=1e-5), "mismatch vs reference"
    assert jnp.allclose(P, P_ref, rtol=2e-4, atol=1e-5), "mismatch vs reference"

    print("KERNEL_OK")
</pallas_src>

<mosaic_0001>
module attributes {stable_mosaic.version = 11 : i64} {
  func.func @_matching_kernel(%arg0: memref<1xf32, #tpu.memory_space<smem>>, %arg1: memref<16x32xf32, #tpu.memory_space<vmem>>, %arg2: memref<128x32xf32, #tpu.memory_space<vmem>>, %arg3: memref<16x128xf32, #tpu.memory_space<vmem>>, %arg4: memref<128x16xf32, #tpu.memory_space<vmem>>) attributes {dimension_semantics = [], scalar_prefetch = 0 : i64, scratch_operands = 1 : i64, tpu.core_type = #tpu.core_type<tc>} {
    %c0 = arith.constant 0 : index
    %0 = memref.load %arg0[%c0] : memref<1xf32, #tpu.memory_space<smem>>
    %c0_0 = arith.constant 0 : index
    %c0_1 = arith.constant 0 : index
    %1 = vector.load %arg1[%c0_0, %c0_1] : memref<16x32xf32, #tpu.memory_space<vmem>>, vector<16x32xf32>
    %c0_2 = arith.constant 0 : index
    %c0_3 = arith.constant 0 : index
    %2 = vector.load %arg2[%c0_2, %c0_3] : memref<128x32xf32, #tpu.memory_space<vmem>>, vector<128x32xf32>
    %cst = arith.constant dense<0.000000e+00> : vector<16x128xf32>
    %3 = tpu.matmul %1, %2, %cst {dimension_numbers = #tpu.dot_dimension_numbers<[1], [1], [0], [0], [0, 0, 1, 0], [], []>} : vector<16x32xf32>, vector<128x32xf32>, vector<16x128xf32> -> vector<16x128xf32>
    %4 = tpu.iota {dimensions = array<i32: 0>} : vector<16x128xi32>
    %5 = tpu.iota {dimensions = array<i32: 1>} : vector<16x128xi32>
    %c9_i32 = arith.constant 9 : i32
    %6 = vector.broadcast %c9_i32 : i32 to vector<16x128xi32>
    %7 = arith.cmpi slt, %4, %6 : vector<16x128xi32>
    %c9_i32_4 = arith.constant 9 : i32
    %8 = vector.broadcast %c9_i32_4 : i32 to vector<16x128xi32>
    %9 = arith.cmpi slt, %5, %8 : vector<16x128xi32>
    %10 = arith.andi %7, %9 : vector<16x128xi1>
    %c8_i32 = arith.constant 8 : i32
    %11 = vector.broadcast %c8_i32 : i32 to vector<16x128xi32>
    %12 = arith.cmpi eq, %4, %11 : vector<16x128xi32>
    %c8_i32_5 = arith.constant 8 : i32
    %13 = vector.broadcast %c8_i32_5 : i32 to vector<16x128xi32>
    %14 = arith.cmpi eq, %5, %13 : vector<16x128xi32>
    %15 = arith.ori %12, %14 : vector<16x128xi1>
    %16 = vector.broadcast %0 : f32 to vector<16x128xf32>
    %17 = arith.select %15, %16, %3 : vector<16x128xi1>, vector<16x128xf32>
    %cst_6 = arith.constant 1.000000e+01 : f32
    %18 = vector.broadcast %cst_6 : f32 to vector<16x128xf32>
    %19 = arith.mulf %17, %18 : vector<16x128xf32>
    %20 = math.exp %19 : vector<16x128xf32>
    %cst_7 = arith.constant 0.000000e+00 : f32
    %21 = vector.broadcast %cst_7 : f32 to vector<16x128xf32>
    %22 = arith.select %10, %20, %21 : vector<16x128xi1>, vector<16x128xf32>
    %c0_8 = arith.constant 0 : index
    %c0_9 = arith.constant 0 : index
    %23 = vector.load %arg3[%c0_8, %c0_9] : memref<16x128xf32, #tpu.memory_space<vmem>>, vector<16x128xf32>
    tpu.vector_store %arg3[%c0_8, %c0_9], %22 {strides = array<i32>} : memref<16x128xf32, #tpu.memory_space<vmem>>, vector<16x128xf32>,
    %cst_10 = arith.constant dense<0.000000e+00> : vector<128x16xf32>
    %24 = tpu.matmul %2, %1, %cst_10 {dimension_numbers = #tpu.dot_dimension_numbers<[1], [1], [0], [0], [0, 0, 1, 0], [], []>} : vector<128x32xf32>, vector<16x32xf32>, vector<128x16xf32> -> vector<128x16xf32>
    %25 = tpu.iota {dimensions = array<i32: 0>} : vector<128x16xi32>
    %26 = tpu.iota {dimensions = array<i32: 1>} : vector<128x16xi32>
    %c9_i32_11 = arith.constant 9 : i32
    %27 = vector.broadcast %c9_i32_11 : i32 to vector<128x16xi32>
    %28 = arith.cmpi slt, %25, %27 : vector<128x16xi32>
    %c9_i32_12 = arith.constant 9 : i32
    %29 = vector.broadcast %c9_i32_12 : i32 to vector<128x16xi32>
    %30 = arith.cmpi slt, %26, %29 : vector<128x16xi32>
    %31 = arith.andi %28, %30 : vector<128x16xi1>
    %c8_i32_13 = arith.constant 8 : i32
    %32 = vector.broadcast %c8_i32_13 : i32 to vector<128x16xi32>
    %33 = arith.cmpi eq, %25, %32 : vector<128x16xi32>
    %c8_i32_14 = arith.constant 8 : i32
    %34 = vector.broadcast %c8_i32_14 : i32 to vector<128x16xi32>
    %35 = arith.cmpi eq, %26, %34 : vector<128x16xi32>
    %36 = arith.ori %33, %35 : vector<128x16xi1>
    %37 = vector.broadcast %0 : f32 to vector<128x16xf32>
    %38 = arith.select %36, %37, %24 : vector<128x16xi1>, vector<128x16xf32>
    %cst_15 = arith.constant 1.000000e+01 : f32
    %39 = vector.broadcast %cst_15 : f32 to vector<128x16xf32>
    %40 = arith.mulf %38, %39 : vector<128x16xf32>
    %41 = math.exp %40 : vector<128x16xf32>
    %cst_16 = arith.constant 0.000000e+00 : f32
    %42 = vector.broadcast %cst_16 : f32 to vector<128x16xf32>
    %43 = arith.select %31, %41, %42 : vector<128x16xi1>, vector<128x16xf32>
    %c0_17 = arith.constant 0 : index
    %c0_18 = arith.constant 0 : index
    %44 = vector.load %arg4[%c0_17, %c0_18] : memref<128x16xf32, #tpu.memory_space<vmem>>, vector<128x16xf32>
    tpu.vector_store %arg4[%c0_17, %c0_18], %43 {strides = array<i32>} : memref<128x16xf32, #tpu.memory_space<vmem>>, vector<128x16xf32>,
    %cst_19 = arith.constant 1.000000e+00 : f32
    %45 = vector.broadcast %cst_19 : f32 to vector<128x128xf32>
    %c0_i32 = arith.constant 0 : i32
    %c24_i32 = arith.constant 24 : i32
    %46 = arith.addi %c0_i32, %c24_i32 : i32
    %c1_i32 = arith.constant 1 : i32
    %47 = scf.for %arg5 = %c0_i32 to %46 step %c1_i32 iter_args(%arg6 = %45) -> (vector<128x128xf32>)  : i32 {
      %c0_60 = arith.constant 0 : index
      %c0_61 = arith.constant 0 : index
      %126 = vector.load %arg3[%c0_60, %c0_61] : memref<16x128xf32, #tpu.memory_space<vmem>>, vector<16x128xf32>
      %cst_62 = arith.constant dense<0.000000e+00> : vector<16x128xf32>
      %127 = tpu.matmul %126, %arg6, %cst_62 {dimension_numbers = #tpu.dot_dimension_numbers<[1], [0], [0], [1], [0, 0, 1, 1], [], []>} : vector<16x128xf32>, vector<128x128xf32>, vector<16x128xf32> -> vector<16x128xf32>
      %cst_63 = arith.constant 1.000000e-30 : f32
      %128 = vector.broadcast %cst_63 : f32 to vector<16x128xf32>
      %129 = arith.maximumf %127, %128 : vector<16x128xf32>
      %130 = tpu.reciprocal %129 {approx = true} : vector<16x128xf32> -> vector<16x128xf32>
      %131 = arith.mulf %129, %130 : vector<16x128xf32>
      %cst_64 = arith.constant 2.000000e+00 : f32
      %132 = vector.broadcast %cst_64 : f32 to vector<16x128xf32>
      %133 = arith.subf %132, %131 : vector<16x128xf32>
      %134 = arith.mulf %130, %133 : vector<16x128xf32>
      %c0_65 = arith.constant 0 : index
      %c0_66 = arith.constant 0 : index
      %135 = vector.load %arg4[%c0_65, %c0_66] : memref<128x16xf32, #tpu.memory_space<vmem>>, vector<128x16xf32>
      %cst_67 = arith.constant dense<0.000000e+00> : vector<128x128xf32>
      %136 = tpu.matmul %135, %134, %cst_67 {dimension_numbers = #tpu.dot_dimension_numbers<[1], [0], [0], [1], [0, 0, 1, 1], [], []>} : vector<128x16xf32>, vector<16x128xf32>, vector<128x128xf32> -> vector<128x128xf32>
      %cst_68 = arith.constant 1.000000e-30 : f32
      %137 = vector.broadcast %cst_68 : f32 to vector<128x128xf32>
      %138 = arith.maximumf %136, %137 : vector<128x128xf32>
      %139 = tpu.reciprocal %138 {approx = true} : vector<128x128xf32> -> vector<128x128xf32>
      %140 = arith.mulf %138, %139 : vector<128x128xf32>
      %cst_69 = arith.constant 2.000000e+00 : f32
      %141 = vector.broadcast %cst_69 : f32 to vector<128x128xf32>
      %142 = arith.subf %141, %140 : vector<128x128xf32>
      %143 = arith.mulf %139, %142 : vector<128x128xf32>
      %c0_70 = arith.constant 0 : index
      %c0_71 = arith.constant 0 : index
      %144 = vector.load %arg3[%c0_70, %c0_71] : memref<16x128xf32, #tpu.memory_space<vmem>>, vector<16x128xf32>
      %cst_72 = arith.constant dense<0.000000e+00> : vector<16x128xf32>
      %145 = tpu.matmul %144, %143, %cst_72 {dimension_numbers = #tpu.dot_dimension_numbers<[1], [0], [0], [1], [0, 0, 1, 1], [], []>} : vector<16x128xf32>, vector<128x128xf32>, vector<16x128xf32> -> vector<16x128xf32>
      %cst_73 = arith.constant 1.000000e-30 : f32
      %146 = vector.broadcast %cst_73 : f32 to vector<16x128xf32>
      %147 = arith.maximumf %145, %146 : vector<16x128xf32>
      %148 = tpu.reciprocal %147 {approx = true} : vector<16x128xf32> -> vector<16x128xf32>
      %149 = arith.mulf %147, %148 : vector<16x128xf32>
      %cst_74 = arith.constant 2.000000e+00 : f32
      %150 = vector.broadcast %cst_74 : f32 to vector<16x128xf32>
      %151 = arith.subf %150, %149 : vector<16x128xf32>
      %152 = arith.mulf %148, %151 : vector<16x128xf32>
      %c0_75 = arith.constant 0 : index
      %c0_76 = arith.constant 0 : index
      %153 = vector.load %arg4[%c0_75, %c0_76] : memref<128x16xf32, #tpu.memory_space<vmem>>, vector<128x16xf32>
      %cst_77 = arith.constant dense<0.000000e+00> : vector<128x128xf32>
      %154 = tpu.matmul %153, %152, %cst_77 {dimension_numbers = #tpu.dot_dimension_numbers<[1], [0], [0], [1], [0, 0, 1, 1], [], []>} : vector<128x16xf32>, vector<16x128xf32>, vector<128x128xf32> -> vector<128x128xf32>
      %cst_78 = arith.constant 1.000000e-30 : f32
      %155 = vector.broadcast %cst_78 : f32 to vector<128x128xf32>
      %156 = arith.maximumf %154, %155 : vector<128x128xf32>
      %157 = tpu.reciprocal %156 {approx = true} : vector<128x128xf32> -> vector<128x128xf32>
      %158 = arith.mulf %156, %157 : vector<128x128xf32>
      %cst_79 = arith.constant 2.000000e+00 : f32
      %159 = vector.broadcast %cst_79 : f32 to vector<128x128xf32>
      %160 = arith.subf %159, %158 : vector<128x128xf32>
      %161 = arith.mulf %157, %160 : vector<128x128xf32>
      %c0_80 = arith.constant 0 : index
      %c0_81 = arith.constant 0 : index
      %162 = vector.load %arg3[%c0_80, %c0_81] : memref<16x128xf32, #tpu.memory_space<vmem>>, vector<16x128xf32>
      %cst_82 = arith.constant dense<0.000000e+00> : vector<16x128xf32>
      %163 = tpu.matmul %162, %161, %cst_82 {dimension_numbers = #tpu.dot_dimension_numbers<[1], [0], [0], [1], [0, 0, 1, 1], [], []>} : vector<16x128xf32>, vector<128x128xf32>, vector<16x128xf32> -> vector<16x128xf32>
      %cst_83 = arith.constant 1.000000e-30 : f32
      %164 = vector.broadcast %cst_83 : f32 to vector<16x128xf32>
      %165 = arith.maximumf %163, %164 : vector<16x128xf32>
      %166 = tpu.reciprocal %165 {approx = true} : vector<16x128xf32> -> vector<16x128xf32>
      %167 = arith.mulf %165, %166 : vector<16x128xf32>
      %cst_84 = arith.constant 2.000000e+00 : f32
      %168 = vector.broadcast %cst_84 : f32 to vector<16x128xf32>
      %169 = arith.subf %168, %167 : vector<16x128xf32>
      %170 = arith.mulf %166, %169 : vector<16x128xf32>
      %c0_85 = arith.constant 0 : index
      %c0_86 = arith.constant 0 : index
      %171 = vector.load %arg4[%c0_85, %c0_86] : memref<128x16xf32, #tpu.memory_space<vmem>>, vector<128x16xf32>
      %cst_87 = arith.constant dense<0.000000e+00> : vector<128x128xf32>
      %172 = tpu.matmul %171, %170, %cst_87 {dimension_numbers = #tpu.dot_dimension_numbers<[1], [0], [0], [1], [0, 0, 1, 1], [], []>} : vector<128x16xf32>, vector<16x128xf32>, vector<128x128xf32> -> vector<128x128xf32>
      %cst_88 = arith.constant 1.000000e-30 : f32
      %173 = vector.broadcast %cst_88 : f32 to vector<128x128xf32>
      %174 = arith.maximumf %172, %173 : vector<128x128xf32>
      %175 = tpu.reciprocal %174 {approx = true} : vector<128x128xf32> -> vector<128x128xf32>
      %176 = arith.mulf %174, %175 : vector<128x128xf32>
      %cst_89 = arith.constant 2.000000e+00 : f32
      %177 = vector.broadcast %cst_89 : f32 to vector<128x128xf32>
      %178 = arith.subf %177, %176 : vector<128x128xf32>
      %179 = arith.mulf %175, %178 : vector<128x128xf32>
      %c0_90 = arith.constant 0 : index
      %c0_91 = arith.constant 0 : index
      %180 = vector.load %arg3[%c0_90, %c0_91] : memref<16x128xf32, #tpu.memory_space<vmem>>, vector<16x128xf32>
      %cst_92 = arith.constant dense<0.000000e+00> : vector<16x128xf32>
      %181 = tpu.matmul %180, %179, %cst_92 {dimension_numbers = #tpu.dot_dimension_numbers<[1], [0], [0], [1], [0, 0, 1, 1], [], []>} : vector<16x128xf32>, vector<128x128xf32>, vector<16x128xf32> -> vector<16x128xf32>
      %cst_93 = arith.constant 1.000000e-30 : f32
      %182 = vector.broadcast %cst_93 : f32 to vector<16x128xf32>
      %183 = arith.maximumf %181, %182 : vector<16x128xf32>
      %184 = tpu.reciprocal %183 {approx = true} : vector<16x128xf32> -> vector<16x128xf32>
      %185 = arith.mulf %183, %184 : vector<16x128xf32>
      %cst_94 = arith.constant 2.000000e+00 : f32
      %186 = vector.broadcast %cst_94 : f32 to vector<16x128xf32>
      %187 = arith.subf %186, %185 : vector<16x128xf32>
      %188 = arith.mulf %184, %187 : vector<16x128xf32>
      %c0_95 = arith.constant 0 : index
      %c0_96 = arith.constant 0 : index
      %189 = vector.load %arg4[%c0_95, %c0_96] : memref<128x16xf32, #tpu.memory_space<vmem>>, vector<128x16xf32>
      %cst_97 = arith.constant dense<0.000000e+00> : vector<128x128xf32>
      %190 = tpu.matmul %189, %188, %cst_97 {dimension_numbers = #tpu.dot_dimension_numbers<[1], [0], [0], [1], [0, 0, 1, 1], [], []>} : vector<128x16xf32>, vector<16x128xf32>, vector<128x128xf32> -> vector<128x128xf32>
      %cst_98 = arith.constant 1.000000e-30 : f32
      %191 = vector.broadcast %cst_98 : f32 to vector<128x128xf32>
      %192 = arith.maximumf %190, %191 : vector<128x128xf32>
      %193 = tpu.reciprocal %192 {approx = true} : vector<128x128xf32> -> vector<128x128xf32>
      %194 = arith.mulf %192, %193 : vector<128x128xf32>
      %cst_99 = arith.constant 2.000000e+00 : f32
      %195 = vector.broadcast %cst_99 : f32 to vector<128x128xf32>
      %196 = arith.subf %195, %194 : vector<128x128xf32>
      %197 = arith.mulf %193, %196 : vector<128x128xf32>
      scf.yield %197 : vector<128x128xf32>
    }
    %c0_20 = arith.constant 0 : index
    %c0_21 = arith.constant 0 : index
    %48 = vector.load %arg3[%c0_20, %c0_21] : memref<16x128xf32, #tpu.memory_space<vmem>>, vector<16x128xf32>
    %cst_22 = arith.constant dense<0.000000e+00> : vector<16x128xf32>
    %49 = tpu.matmul %48, %47, %cst_22 {dimension_numbers = #tpu.dot_dimension_numbers<[1], [0], [0], [1], [0, 0, 1, 1], [], []>} : vector<16x128xf32>, vector<128x128xf32>, vector<16x128xf32> -> vector<16x128xf32>
    %cst_23 = arith.constant 1.000000e-30 : f32
    %50 = vector.broadcast %cst_23 : f32 to vector<16x128xf32>
    %51 = arith.maximumf %49, %50 : vector<16x128xf32>
    %52 = tpu.reciprocal %51 {approx = true} : vector<16x128xf32> -> vector<16x128xf32>
    %53 = arith.mulf %51, %52 : vector<16x128xf32>
    %cst_24 = arith.constant 2.000000e+00 : f32
    %54 = vector.broadcast %cst_24 : f32 to vector<16x128xf32>
    %55 = arith.subf %54, %53 : vector<16x128xf32>
    %56 = arith.mulf %52, %55 : vector<16x128xf32>
    %c0_25 = arith.constant 0 : index
    %c0_26 = arith.constant 0 : index
    %57 = vector.load %arg4[%c0_25, %c0_26] : memref<128x16xf32, #tpu.memory_space<vmem>>, vector<128x16xf32>
    %cst_27 = arith.constant dense<0.000000e+00> : vector<128x128xf32>
    %58 = tpu.matmul %57, %56, %cst_27 {dimension_numbers = #tpu.dot_dimension_numbers<[1], [0], [0], [1], [0, 0, 1, 1], [], []>} : vector<128x16xf32>, vector<16x128xf32>, vector<128x128xf32> -> vector<128x128xf32>
    %cst_28 = arith.constant 1.000000e-30 : f32
    %59 = vector.broadcast %cst_28 : f32 to vector<128x128xf32>
    %60 = arith.maximumf %58, %59 : vector<128x128xf32>
    %61 = tpu.reciprocal %60 {approx = true} : vector<128x128xf32> -> vector<128x128xf32>
    %62 = arith.mulf %60, %61 : vector<128x128xf32>
    %cst_29 = arith.constant 2.000000e+00 : f32
    %63 = vector.broadcast %cst_29 : f32 to vector<128x128xf32>
    %64 = arith.subf %63, %62 : vector<128x128xf32>
    %65 = arith.mulf %61, %64 : vector<128x128xf32>
    %c0_30 = arith.constant 0 : index
    %c0_31 = arith.constant 0 : index
    %66 = vector.load %arg3[%c0_30, %c0_31] : memref<16x128xf32, #tpu.memory_space<vmem>>, vector<16x128xf32>
    %cst_32 = arith.constant dense<0.000000e+00> : vector<16x128xf32>
    %67 = tpu.matmul %66, %65, %cst_32 {dimension_numbers = #tpu.dot_dimension_numbers<[1], [0], [0], [1], [0, 0, 1, 1], [], []>} : vector<16x128xf32>, vector<128x128xf32>, vector<16x128xf32> -> vector<16x128xf32>
    %cst_33 = arith.constant 1.000000e-30 : f32
    %68 = vector.broadcast %cst_33 : f32 to vector<16x128xf32>
    %69 = arith.maximumf %67, %68 : vector<16x128xf32>
    %70 = tpu.reciprocal %69 {approx = true} : vector<16x128xf32> -> vector<16x128xf32>
    %71 = arith.mulf %69, %70 : vector<16x128xf32>
    %cst_34 = arith.constant 2.000000e+00 : f32
    %72 = vector.broadcast %cst_34 : f32 to vector<16x128xf32>
    %73 = arith.subf %72, %71 : vector<16x128xf32>
    %74 = arith.mulf %70, %73 : vector<16x128xf32>
    %c0_35 = arith.constant 0 : index
    %c0_36 = arith.constant 0 : index
    %75 = vector.load %arg4[%c0_35, %c0_36] : memref<128x16xf32, #tpu.memory_space<vmem>>, vector<128x16xf32>
    %cst_37 = arith.constant dense<0.000000e+00> : vector<128x128xf32>
    %76 = tpu.matmul %75, %74, %cst_37 {dimension_numbers = #tpu.dot_dimension_numbers<[1], [0], [0], [1], [0, 0, 1, 1], [], []>} : vector<128x16xf32>, vector<16x128xf32>, vector<128x128xf32> -> vector<128x128xf32>
    %cst_38 = arith.constant 1.000000e-30 : f32
    %77 = vector.broadcast %cst_38 : f32 to vector<128x128xf32>
    %78 = arith.maximumf %76, %77 : vector<128x128xf32>
    %79 = tpu.reciprocal %78 {approx = true} : vector<128x128xf32> -> vector<128x128xf32>
    %80 = arith.mulf %78, %79 : vector<128x128xf32>
    %cst_39 = arith.constant 2.000000e+00 : f32
    %81 = vector.broadcast %cst_39 : f32 to vector<128x128xf32>
    %82 = arith.subf %81, %80 : vector<128x128xf32>
    %83 = arith.mulf %79, %82 : vector<128x128xf32>
    %c0_40 = arith.constant 0 : index
    %c0_41 = arith.constant 0 : index
    %84 = vector.load %arg3[%c0_40, %c0_41] : memref<16x128xf32, #tpu.memory_space<vmem>>, vector<16x128xf32>
    %cst_42 = arith.constant dense<0.000000e+00> : vector<16x128xf32>
    %85 = tpu.matmul %84, %83, %cst_42 {dimension_numbers = #tpu.dot_dimension_numbers<[1], [0], [0], [1], [0, 0, 1, 1], [], []>} : vector<16x128xf32>, vector<128x128xf32>, vector<16x128xf32> -> vector<16x128xf32>
    %cst_43 = arith.constant 1.000000e-30 : f32
    %86 = vector.broadcast %cst_43 : f32 to vector<16x128xf32>
    %87 = arith.maximumf %85, %86 : vector<16x128xf32>
    %88 = tpu.reciprocal %87 {approx = true} : vector<16x128xf32> -> vector<16x128xf32>
    %89 = arith.mulf %87, %88 : vector<16x128xf32>
    %cst_44 = arith.constant 2.000000e+00 : f32
    %90 = vector.broadcast %cst_44 : f32 to vector<16x128xf32>
    %91 = arith.subf %90, %89 : vector<16x128xf32>
    %92 = arith.mulf %88, %91 : vector<16x128xf32>
    %c0_45 = arith.constant 0 : index
    %c0_46 = arith.constant 0 : index
    %93 = vector.load %arg4[%c0_45, %c0_46] : memref<128x16xf32, #tpu.memory_space<vmem>>, vector<128x16xf32>
    %cst_47 = arith.constant dense<0.000000e+00> : vector<128x128xf32>
    %94 = tpu.matmul %93, %92, %cst_47 {dimension_numbers = #tpu.dot_dimension_numbers<[1], [0], [0], [1], [0, 0, 1, 1], [], []>} : vector<128x16xf32>, vector<16x128xf32>, vector<128x128xf32> -> vector<128x128xf32>
    %cst_48 = arith.constant 1.000000e-30 : f32
    %95 = vector.broadcast %cst_48 : f32 to vector<128x128xf32>
    %96 = arith.maximumf %94, %95 : vector<128x128xf32>
    %97 = tpu.reciprocal %96 {approx = true} : vector<128x128xf32> -> vector<128x128xf32>
    %98 = arith.mulf %96, %97 : vector<128x128xf32>
    %cst_49 = arith.constant 2.000000e+00 : f32
    %99 = vector.broadcast %cst_49 : f32 to vector<128x128xf32>
    %100 = arith.subf %99, %98 : vector<128x128xf32>
    %101 = arith.mulf %97, %100 : vector<128x128xf32>
    %c0_50 = arith.constant 0 : index
    %c0_51 = arith.constant 0 : index
    %102 = vector.load %arg3[%c0_50, %c0_51] : memref<16x128xf32, #tpu.memory_space<vmem>>, vector<16x128xf32>
    %cst_52 = arith.constant dense<0.000000e+00> : vector<16x128xf32>
    %103 = tpu.matmul %102, %101, %cst_52 {dimension_numbers = #tpu.dot_dimension_numbers<[1], [0], [0], [1], [0, 0, 1, 1], [], []>} : vector<16x128xf32>, vector<128x128xf32>, vector<16x128xf32> -> vector<16x128xf32>
    %104 = vector.extract_strided_slice %103 {offsets = [0, 0], sizes = [16, 1], strides = [1, 1]} : vector<16x128xf32> to vector<16x1xf32>
    %cst_53 = arith.constant 1.000000e-30 : f32
    %105 = vector.broadcast %cst_53 : f32 to vector<16x1xf32>
    %106 = arith.maximumf %104, %105 : vector<16x1xf32>
    %107 = tpu.reciprocal %106 {approx = true} : vector<16x1xf32> -> vector<16x1xf32>
    %108 = arith.mulf %106, %107 : vector<16x1xf32>
    %cst_54 = arith.constant 2.000000e+00 : f32
    %109 = vector.broadcast %cst_54 : f32 to vector<16x1xf32>
    %110 = arith.subf %109, %108 : vector<16x1xf32>
    %111 = arith.mulf %107, %110 : vector<16x1xf32>
    %112 = vector.broadcast %111 : vector<16x1xf32> to vector<16x128xf32>
    %113 = arith.mulf %102, %112 : vector<16x128xf32>
    %cst_55 = arith.constant dense<0.000000e+00> : vector<128xf32>
    %114 = vector.multi_reduction <add>, %113, %cst_55 [0] : vector<16x128xf32> to vector<128xf32>
    %115 = vector.shape_cast %114 : vector<128xf32> to vector<1x128xf32>
    %cst_56 = arith.constant 1.000000e-30 : f32
    %116 = vector.broadcast %cst_56 : f32 to vector<1x128xf32>
    %117 = arith.maximumf %115, %116 : vector<1x128xf32>
    %118 = tpu.reciprocal %117 {approx = true} : vector<1x128xf32> -> vector<1x128xf32>
    %119 = arith.mulf %117, %118 : vector<1x128xf32>
    %cst_57 = arith.constant 2.000000e+00 : f32
    %120 = vector.broadcast %cst_57 : f32 to vector<1x128xf32>
    %121 = arith.subf %120, %119 : vector<1x128xf32>
    %122 = arith.mulf %118, %121 : vector<1x128xf32>
    %123 = vector.broadcast %122 : vector<1x128xf32> to vector<16x128xf32>
    %124 = arith.mulf %113, %123 : vector<16x128xf32>
    %c0_58 = arith.constant 0 : index
    %c0_59 = arith.constant 0 : index
    %125 = vector.load %arg3[%c0_58, %c0_59] : memref<16x128xf32, #tpu.memory_space<vmem>>, vector<16x128xf32>
    tpu.vector_store %arg3[%c0_58, %c0_59], %124 {strides = array<i32>} : memref<16x128xf32, #tpu.memory_space<vmem>>, vector<16x128xf32>,
    return
  }
}

</mosaic_0001>

<bundles_post_ra>
// kernel: tpu_custom_call.1
= control target key start
LH: loop header
LB: loop body
LE: loop exit
PB: predicated region body
PF: predicated region fallthrough
CT: control target
= control target key end

     0   :  { %9 = vsyncpa [#allocation5], 0  ;;  %vm35_vm0 = vcmask 261120   ;;  %vm488_vm2 = vcmask 130048   ;;  %v4926_v28 = vmov 0.0   ;;  %v165_v29 = vlaneseq  ;;  %s5538_s0 = inlined_call_operand.<no memory space> [shape: f32[1], index: 0, kind: input, shape index: {}]   ;;  %s5539_s1 = inlined_call_operand.vmem [shape: f32[16,32], index: 1, kind: input, shape index: {}]   ;;  %s5540_s2 = inlined_call_operand.vmem [shape: f32[128,32], index: 2, kind: input, shape index: {}]   ;;  %s5541_s3 = inlined_call_operand.hbm [shape: f32[16,128], index: 3, kind: output, shape index: {}]  }
   0x1   :  { %v19_v0 = vld [vmem:[%s5540_s2] sm:$0xff]  ;;  %v20_v1 = vld [vmem:[%s5540_s2 + $0x8] sm:$0xff]  ;;  %vm4959_vm1 = vmpackc.low %vm35_vm0, %vm35_vm0  ;;  %491 = vst.msk [vmem:[#allocation2 + $0x10] sm:$0xff] %vm488_vm2, %v4926_v28  ;;  %v180_v34 = vstv %s5538_s0  ;;  %s5138_s0 = smov 0  }
   0x2   :  { %v4004_v2 = vpack.c.bf16 %v20_v1, %v19_v0  ;;  %v21_v4 = vld [vmem:[%s5540_s2 + $0x10] sm:$0xff]  ;;  %v22_v5 = vld [vmem:[%s5540_s2 + $0x18] sm:$0xff]  ;;  %3504 = vmatprep.mubr.msk.f32.mxu1 %vm35_vm0, %v19_v0  ;;  %v17_v7 = vld [vmem:[%s5539_s1] sm:$0xff]  ;;  %492 = vst.msk [vmem:[#allocation2 + $0x18] sm:$0xff] %vm488_vm2, %v4926_v28  ;;  %v166_v30 = vshrl.u32 %v165_v29, 7  ;;  %v169_v32 = vand.u32 127, %v165_v29 }
   0x3   :  { %v4010_v6 = vpack.c.bf16 %v22_v5, %v21_v4  ;;  %v18_v8 = vld [vmem:[%s5539_s1 + $0x8] sm:$0xff]  ;;  %3497 = vmatprep.mubr.msk.f32.mxu0 %vm35_vm0, %v17_v7  ;;  %v23_v9 = vld [vmem:[%s5540_s2 + $0x20] sm:$0xff]  ;;  %v25_v13 = vld [vmem:[%s5540_s2 + $0x30] sm:$0xff]  ;;  %493 = vst.msk [vmem:[#allocation2 + $0x20] sm:$0xff] %vm488_vm2, %v4926_v28 }
   0x4   :  { %4006 = vmatprep.subr.msk.bf16.mxu0 %vm4959_vm1, %v4004_v2  ;;  %v24_v10 = vld [vmem:[%s5540_s2 + $0x28] sm:$0xff]  ;;  %v4052_v11 = vpack.c.bf16 %v18_v8, %v17_v7  ;;  %v26_v14 = vld [vmem:[%s5540_s2 + $0x38] sm:$0xff]  ;;  %v27_v16 = vld [vmem:[%s5540_s2 + $0x40] sm:$0xff]  ;;  %494 = vst.msk [vmem:[#allocation2 + $0x28] sm:$0xff] %vm488_vm2, %v4926_v28  ;;  %v167_v31 = vadd.s32 8, %v166_v30  ;;  %vm177_vm4 = vcmp.eq.s32.totalorder %v169_v32, 8 }
   0x5   :  { %4009 = vmatpush3.bf16.xpose.msk.msra.mxu0 %vm4959_vm1, %v4004_v2  ;;  %v4016_v12 = vpack.c.bf16 %v24_v10, %v23_v9  ;;  %v4022_v15 = vpack.c.bf16 %v26_v14, %v25_v13  ;;  %v28_v17 = vld [vmem:[%s5540_s2 + $0x48] sm:$0xff]  ;;  %v29_v19 = vld [vmem:[%s5540_s2 + $0x50] sm:$0xff]  ;;  %v30_v20 = vld [vmem:[%s5540_s2 + $0x58] sm:$0xff]  ;;  %495 = vst.msk [vmem:[#allocation2 + $0x30] sm:$0xff] %vm488_vm2, %v4926_v28  ;;  %vm172_vm7 = vcmp.lt.s32.totalorder %v169_v32, 9 }
   0x6   :  { %4012 = vmatprep.subr.msk.bf16.mxu0 %vm4959_vm1, %v4010_v6  ;;  %4054 = vmatprep.subr.msk.bf16.mxu1 %vm4959_vm1, %v4052_v11  ;;  %v4028_v18 = vpack.c.bf16 %v28_v17, %v27_v16  ;;  %v4034_v21 = vpack.c.bf16 %v30_v20, %v29_v19  ;;  %v31_v22 = vld [vmem:[%s5540_s2 + $0x60] sm:$0xff]  ;;  %v32_v23 = vld [vmem:[%s5540_s2 + $0x68] sm:$0xff]  ;;  %v33_v24 = vld [vmem:[%s5540_s2 + $0x70] sm:$0xff]  ;;  %496 = vst.msk [vmem:[#allocation2 + $0x38] sm:$0xff] %vm488_vm2, %v4926_v28  ;;  %vm176_vm3 = vcmp.eq.s32.totalorder %v167_v31, 8  ;;  %vm171_vm6 = vcmp.lt.s32.totalorder %v167_v31, 9 }
   0x7   :  { %4057 = vmatpush3.bf16.xpose.msk.msra.mxu1 %vm4959_vm1, %v4052_v11  ;;  %v4040_v25 = vpack.c.bf16 %v32_v23, %v31_v22  ;;  %v34_v26 = vld [vmem:[%s5540_s2 + $0x78] sm:$0xff]  ;;  %497 = vst.msk [vmem:[#allocation2 + $0x40] sm:$0xff] %vm488_vm2, %v4926_v28  ;;  %498 = vst.msk [vmem:[#allocation2 + $0x48] sm:$0xff] %vm488_vm2, %v4926_v28  ;;  %v5108_v11 = vmov 1.0  }
   0x8   :  { %v4046_v27 = vpack.c.bf16 %v34_v26, %v33_v24  ;;  %499 = vst.msk [vmem:[#allocation2 + $0x50] sm:$0xff] %vm488_vm2, %v4926_v28  ;;  %500 = vst.msk [vmem:[#allocation2 + $0x58] sm:$0xff] %vm488_vm2, %v4926_v28 }
   0x9   :  { %501 = vst.msk [vmem:[#allocation2 + $0x60] sm:$0xff] %vm488_vm2, %v4926_v28  ;;  %502 = vst.msk [vmem:[#allocation2 + $0x68] sm:$0xff] %vm488_vm2, %v4926_v28 }
   0xa   :  { %503 = vst.msk [vmem:[#allocation2 + $0x70] sm:$0xff] %vm488_vm2, %v4926_v28  ;;  %504 = vst.msk [vmem:[#allocation2 + $0x78] sm:$0xff] %vm488_vm2, %v4926_v28 }
   0xb   :  { %vm5080_vm5 = vmor %vm176_vm3, %vm177_vm4 }
   0xc   :  { %vm5091_vm8 = vmand %vm171_vm6, %vm172_vm7 }
   0xd   :  { %4015 = vmatpush3.bf16.xpose.msk.msra.mxu0 %vm4959_vm1, %v4010_v6 }
   0xe   :  { %4018 = vmatprep.subr.msk.bf16.mxu0 %vm4959_vm1, %v4016_v12  ;;  %3505 = vmatmul.mubr.msk.f32.vlgmr.msra.gmra.mrb[0].mxu1 %vm35_vm0, %v20_v1 }
   0xf   :  { %3507 = vmatprep.mubr.msk.f32.mxu1 %vm35_vm0, %v21_v4 }
  0x12   :  { %3508 = vmatmul.mubr.msk.f32.gmra.mrb[2].mxu1 %vm35_vm0, %v22_v5 }
  0x13   :  { %3510 = vmatprep.mubr.msk.f32.mxu1 %vm35_vm0, %v23_v9 }
  0x15   :  { %4021 = vmatpush3.bf16.xpose.msk.msra.mxu0 %vm4959_vm1, %v4016_v12  ;;  %v5110_v12 = vmov 1.0  }
  0x16   :  { %4024 = vmatprep.subr.msk.bf16.mxu0 %vm4959_vm1, %v4022_v15  ;;  %3511 = vmatmul.mubr.msk.f32.gmra.mrb[4].mxu1 %vm35_vm0, %v24_v10  ;;  %v5106_v10 = vmov 1.0  }
  0x17   :  { %3513 = vmatprep.mubr.msk.f32.mxu1 %vm35_vm0, %v25_v13  ;;  %v5112_v13 = vmov 1.0  }
  0x1a   :  { %3514 = vmatmul.mubr.msk.f32.gmra.mrb[6].mxu1 %vm35_vm0, %v26_v14  ;;  %v5114_v14 = vmov 1.0  }
  0x1b   :  { %3516 = vmatprep.mubr.msk.f32.mxu1 %vm35_vm0, %v27_v16  ;;  %v5118_v16 = vmov 1.0  }
  0x1d   :  { %4027 = vmatpush3.bf16.xpose.msk.msra.mxu0 %vm4959_vm1, %v4022_v15  ;;  %v5116_v15 = vmov 1.0  }
  0x1e   :  { %4030 = vmatprep.subr.msk.bf16.mxu0 %vm4959_vm1, %v4028_v18  ;;  %3517 = vmatmul.mubr.msk.f32.gmra.mrb[8].mxu1 %vm35_vm0, %v28_v17  ;;  %v5120_v17 = vmov 1.0  }
  0x1f   :  { %3519 = vmatprep.mubr.msk.f32.mxu1 %vm35_vm0, %v29_v19  ;;  %v5124_v19 = vmov 1.0  }
  0x22   :  { %3520 = vmatmul.mubr.msk.f32.gmra.mrb[10].mxu1 %vm35_vm0, %v30_v20  ;;  %v5126_v20 = vmov 1.0  }
  0x23   :  { %3522 = vmatprep.mubr.msk.f32.mxu1 %vm35_vm0, %v31_v22  ;;  %v5130_v22 = vmov 1.0  }
  0x25   :  { %4033 = vmatpush3.bf16.xpose.msk.msra.mxu0 %vm4959_vm1, %v4028_v18  ;;  %v5122_v18 = vmov 1.0  }
  0x26   :  { %4036 = vmatprep.subr.msk.bf16.mxu0 %vm4959_vm1, %v4034_v21  ;;  %3523 = vmatmul.mubr.msk.f32.gmra.mrb[12].mxu1 %vm35_vm0, %v32_v23  ;;  %v5132_v23 = vmov 1.0  }
  0x27   :  { %3525 = vmatprep.mubr.msk.f32.mxu1 %vm35_vm0, %v33_v24  ;;  %v5134_v24 = vmov 1.0  }
  0x2a   :  { %3526 = vmatmul.mubr.msk.f32.gmra.mrb[14].mxu1 %vm35_vm0, %v34_v26 }
  0x2d   :  { %4039 = vmatpush3.bf16.xpose.msk.msra.mxu0 %vm4959_vm1, %v4034_v21  ;;  %v5128_v21 = vmov 1.0  }
  0x2e   :  { %4042 = vmatprep.subr.msk.bf16.mxu0 %vm4959_vm1, %v4040_v25 }
  0x35   :  { %4045 = vmatpush3.bf16.xpose.msk.msra.mxu0 %vm4959_vm1, %v4040_v25  ;;  %v5136_v25 = vmov 1.0  }
  0x36   :  { %4048 = vmatprep.subr.msk.bf16.mxu0 %vm4959_vm1, %v4046_v27 }
  0x3d   :  { %4051 = vmatpush3.bf16.xpose.msk.msra.mxu0 %vm4959_vm1, %v4046_v27 }
  0x44   :  { %3498 = vmatmul.mubr.msk.f32.vlgmr.msra.gmra.mrb[0].mxu0 %vm35_vm0, %v18_v8 }
  0xe1   :  { %v3506_v35 = vpop.f32.mrb[0].mxu1 }
  0xe2   :  { %v409_v36 = vsel %vm5080_vm5, %v180_v34, %v3506_v35  ;;  %v259_v37 = vpop.f32.mrb[1].mxu1 }
  0xe3   :  { %v425_v38 = vmul.f32 10.0, %v409_v36  ;;  %v408_v39 = vsel %vm177_vm4, %v180_v34, %v259_v37 }
  0xe4   :  { %v424_v40 = vmul.f32 10.0, %v408_v39 }
  0xe5   :  { %v442_v41 = vmul.f32 1.442695, %v425_v38  ;;  %v3509_v42 = vpop.f32.mrb[2].mxu1 }
  0xe6   :  { %v440_v43 = vmul.f32 1.442695, %v424_v40  ;;  %v269_v44 = vpop.f32.mrb[3].mxu1 }
  0xe7   :  { %4485 = vpow2.f32 %v442_v41 }
  0xe8   :  { %4487 = vpow2.f32 %v440_v43 }
  0xe9   :  { %v3512_v45 = vpop.f32.mrb[4].mxu1 }
  0xea   :  { %v279_v46 = vpop.f32.mrb[5].mxu1 }
  0xed   :  { %v3515_v47 = vpop.f32.mrb[6].mxu1 }
  0xee   :  { %v289_v48 = vpop.f32.mrb[7].mxu1 }
  0xf1   :  { %v4486_v50 = vpop.eup %4485  ;;  %v3518_v51 = vpop.f32.mrb[8].mxu1 }
  0xf2   :  { %v4488_v52 = vpop.eup %4487  ;;  %v473_v53 = vsel %vm5091_vm8, %v4486_v50, 0.0  ;;  %v299_v54 = vpop.f32.mrb[9].mxu1 }
  0xf3   :  { %490 = vst.msk [vmem:[#allocation2 + $0x8] sm:$0xff] %vm488_vm2, %v473_v53  ;;  %v472_v55 = vsel %vm172_vm7, %v4488_v52, 0.0 }
  0xf4   :  { %489 = vst.msk [vmem:[#allocation2] sm:$0xff] %vm488_vm2, %v472_v55 }
  0xf5   :  { %v3521_v56 = vpop.f32.mrb[10].mxu1 }
  0xf6   :  { %v309_v57 = vpop.f32.mrb[11].mxu1 }
  0xf9   :  { %v3524_v58 = vpop.f32.mrb[12].mxu1 }
  0xfa   :  { %v319_v59 = vpop.f32.mrb[13].mxu1 }
  0xfd   :  { %v3527_v60 = vpop.f32.mrb[14].mxu1 }
  0xfe   :  { %v329_v61 = vpop.f32.mrb[15].mxu1 }
 0x117   :  { %v3499_v62 = vpop.f32.mrb[0].mxu0 }
 0x118   :  { %v182_v63 = vsel %vm5080_vm5, %v180_v34, %v3499_v62  ;;  %v156_v0 = vpop.f32.mrb[1].mxu0 }
 0x119   :  { %v184_v1 = vmul.f32 10.0, %v182_v63  ;;  %v181_v2 = vsel %vm177_vm4, %v180_v34, %v156_v0 }
 0x11a   :  { %v183_v3 = vmul.f32 10.0, %v181_v2 }
 0x11b   :  { %v187_v4 = vmul.f32 1.442695, %v184_v1 }
 0x11c   :  { %v185_v5 = vmul.f32 1.442695, %v183_v3 }
 0x11d   :  { %4489 = vpow2.f32 %v187_v4 }
 0x11e   :  { %4491 = vpow2.f32 %v185_v5 }
 0x127   :  { %v4490_v6 = vpop.eup %4489 }
 0x128   :  { %v4492_v7 = vpop.eup %4491  ;;  %v190_v8 = vsel %vm5091_vm8, %v4490_v6, 0.0 }
 0x129   :  { %192 = vst [vmem:[#allocation4 + $0x8] sm:$0xff] %v190_v8  ;;  %v189_v9 = vsel %vm172_vm7, %v4492_v7, 0.0 }
 0x12a   :  { %191 = vst [vmem:[#allocation4] sm:$0xff] %v189_v9 }
 0x12b LB: > { %v4058_v27 = vpack.c.bf16 %v4916_v24, %v4920_v25  ;;  %v4062_v28 = vpack.c.bf16 %v4908_v22, %v4912_v23  ;;  %v4066_v29 = vpack.c.bf16 %v4900_v20, %v4904_v21  ;;  %v4070_v30 = vpack.c.bf16 %v4892_v18, %v4896_v19  ;;  %v5165_v36 = vld [vmem:[#allocation2] sm:$0xff]  ;;  %v5171_v50 = vld [vmem:[#allocation2 + $0x8] sm:$0xff]  ;;  %v5173_v51 = vld [vmem:[#allocation2 + $0x10] sm:$0xff]  ;;  %s510_s0 = sadd.s32 1, %s4924_s0   ;;  %s4924_s0 = sphi %s5138_s0, %s510_s0   ;;  %v4920_v25 = vphi %v5136_v25, %v5569_v25   ;;  %v4916_v24 = vphi %v5134_v24, %v5568_v24   ;;  %v4912_v23 = vphi %v5132_v23, %v5567_v23   ;;  %v4908_v22 = vphi %v5130_v22, %v5566_v22   ;;  %v4904_v21 = vphi %v5128_v21, %v5565_v21   ;;  %v4900_v20 = vphi %v5126_v20, %v5564_v20   ;;  %v4896_v19 = vphi %v5124_v19, %v5563_v19   ;;  %v4892_v18 = vphi %v5122_v18, %v5562_v18   ;;  %v4888_v17 = vphi %v5120_v17, %v5561_v17   ;;  %v4884_v16 = vphi %v5118_v16, %v5560_v16   ;;  %v4880_v15 = vphi %v5116_v15, %v5559_v15   ;;  %v4876_v14 = vphi %v5114_v14, %v5558_v14   ;;  %v4872_v13 = vphi %v5112_v13, %v5557_v13   ;;  %v4868_v12 = vphi %v5110_v12, %v5556_v12   ;;  %v4864_v11 = vphi %v5108_v11, %v5555_v11   ;;  %v4860_v10 = vphi %v5106_v10, %v5554_v10  }
 0x12c   : > { %v4074_v31 = vpack.c.bf16 %v4884_v16, %v4888_v17  ;;  %v4078_v32 = vpack.c.bf16 %v4876_v14, %v4880_v15  ;;  %v4082_v33 = vpack.c.bf16 %v4868_v12, %v4872_v13  ;;  %v4086_v34 = vpack.c.bf16 %v4860_v10, %v4864_v11  ;;  %3567 = vmatprep.mubr.msk.f32.mxu1 %vm488_vm2, %v5165_v36  ;;  %v5179_v52 = vld [vmem:[#allocation2 + $0x18] sm:$0xff]  ;;  %v5181_v53 = vld [vmem:[#allocation2 + $0x20] sm:$0xff]  ;;  %v5187_v54 = vld [vmem:[#allocation2 + $0x28] sm:$0xff]  ;;  %p5335_p0 = scmp.ge.s32.totalorder %s510_s0, 24  }
 0x12d   : > { %4059 = vmatprep.subr.bf16.mxu0 %v4058_v27  ;;  %v5189_v55 = vld [vmem:[#allocation2 + $0x30] sm:$0xff]  ;;  %v5195_v56 = vld [vmem:[#allocation2 + $0x38] sm:$0xff]  ;;  %v5197_v57 = vld [vmem:[#allocation2 + $0x40] sm:$0xff]  ;;  %s4928_s22 = smov (%p5335_p0), [#allocation4]  }
 0x12e   : > { %4061 = vmatpush3.bf16.msra.mxu0 %v4058_v27  ;;  %v5203_v58 = vld [vmem:[#allocation2 + $0x48] sm:$0xff]  ;;  %v5205_v59 = vld [vmem:[#allocation2 + $0x50] sm:$0xff]  ;;  %v5211_v60 = vld [vmem:[#allocation2 + $0x58] sm:$0xff]  ;;  %s2947_s23 = sshll.u32 (%p5335_p0), %s4928_s22, 4  ;;  %s2948_s23 = int_to_ptr.vmem [resolvable:$true] %s2947_s23 }
 0x12f   : > { %4063 = vmatprep.subr.bf16.mxu0 %v4062_v28  ;;  %v5213_v61 = vld [vmem:[#allocation2 + $0x60] sm:$0xff]  ;;  %v5219_v62 = vld [vmem:[#allocation2 + $0x68] sm:$0xff]  ;;  %v5221_v63 = vld [vmem:[#allocation2 + $0x70] sm:$0xff]  ;;  %s4766_s24 = scalar_lea.vmem (%p5335_p0), %s2948_s23, 256  ;;  %p4771_p2 = scmp.lt.s32.totalorder (%p5335_p0), %s2948_s23, %s2948_s23 }
 0x130   : > { %v5162_v35 = vld [vmem:[#allocation4 + $0x8] sm:$0xff]  ;;  %v5227_v0 = vld [vmem:[#allocation2 + $0x78] sm:$0xff]  ;;  %p4767_p1 = scmp.ne.s32.totalorder (%p5335_p0), %s2948_s23, %s4766_s24  ;;  %p4772_p3 = scmp.lt.s32.totalorder (%p5335_p0), %s4766_s24, %s4766_s24 }
 0x131   : > { %v5159_v26 = vld [vmem:[#allocation4] sm:$0xff] }
 0x132   : > { %3560 = vmatprep.mubr.f32.mxu0 %v5159_v26  ;;  %4065 = vmatpush3.bf16.msra.mxu0 %v4062_v28  ;;  %p4773_p4 = por (%p5335_p0), %p4772_p3, %p4771_p2 }
 0x133   : > { %4067 = vmatprep.subr.bf16.mxu0 %v4066_v29 }
 0x134   :  { %p4774_p5 = pnand (%p5335_p0), %p4773_p4, %p4767_p1 }
 0x136   : > { %4069 = vmatpush3.bf16.msra.mxu0 %v4066_v29 }
 0x137   : > { %4071 = vmatprep.subr.bf16.mxu0 %v4070_v30 }
 0x13a   : > { %4073 = vmatpush3.bf16.msra.mxu0 %v4070_v30 }
 0x13b   : > { %4075 = vmatprep.subr.bf16.mxu0 %v4074_v31 }
 0x13e   : > { %4077 = vmatpush3.bf16.msra.mxu0 %v4074_v31 }
 0x13f   : > { %4079 = vmatprep.subr.bf16.mxu0 %v4078_v32 }
 0x142   : > { %4081 = vmatpush3.bf16.msra.mxu0 %v4078_v32 }
 0x143   : > { %4083 = vmatprep.subr.bf16.mxu0 %v4082_v33 }
 0x146   : > { %4085 = vmatpush3.bf16.msra.mxu0 %v4082_v33 }
 0x147   : > { %4087 = vmatprep.subr.bf16.mxu0 %v4086_v34 }
 0x14a   : > { %4089 = vmatpush3.bf16.msra.mxu0 %v4086_v34 }
 0x14d   : > { %3561 = vmatmul.mubr.f32.vlgmr.msra.gmra.mrb[0].mxu0 %v5162_v35 }
 0x14e   : > { %3630 = vmatprep.mubr.msk.f32.mxu0 %vm488_vm2, %v5165_v36 }
 0x220   : > { %v3562_v37 = vpop.f32.mrb[0].mxu0 }
 0x221   : > { %v605_v38 = vmax.f32 %v3562_v37, 1e-30  ;;  %v595_v39 = vpop.f32.mrb[1].mxu0 }
 0x222   : > { %v604_v40 = vmax.f32 %v595_v39, 1e-30 }
 0x223   : > { %4493 = vrcp.f32 %v605_v38 }
 0x224   : > { %4495 = vrcp.f32 %v604_v40 }
 0x22d   : > { %v4494_v41 = vpop.eup %4493 }
 0x22e   : > { %v4496_v42 = vpop.eup %4495  ;;  %v609_v43 = vmul.f32 %v4494_v41, %v605_v38 }
 0x22f   : > { %v608_v44 = vmul.f32 %v4496_v42, %v604_v40 }
 0x230   : > { %v611_v45 = vsub.f32 2.0, %v609_v43 }
 0x231   : > { %v610_v46 = vsub.f32 2.0, %v608_v44 }
 0x232   : > { %v613_v47 = vmul.f32 %v4494_v41, %v611_v45 }
 0x233   : > { %v612_v48 = vmul.f32 %v4496_v42, %v610_v46 }
 0x235   : > { %v4090_v49 = vpack.c.bf16 %v613_v47, %v612_v48 }
 0x237   : > { %4091 = vmatprep.subr.bf16.mxu1 %v4090_v49 }
 0x238   : > { %4093 = vmatpush3.bf16.msra.mxu1 %v4090_v49 }
 0x23b   : > { %3568 = vmatmul.mubr.msk.f32.vlgmr.msra.gmra.mrb[0].mxu1 %vm488_vm2, %v5171_v50 }
 0x23c   : > { %3570 = vmatprep.mubr.msk.f32.mxu1 %vm488_vm2, %v5173_v51 }
 0x23f   : > { %3571 = vmatmul.mubr.msk.f32.gmra.mrb[2].mxu1 %vm488_vm2, %v5179_v52 }
 0x240   : > { %3573 = vmatprep.mubr.msk.f32.mxu1 %vm488_vm2, %v5181_v53 }
 0x243   : > { %3574 = vmatmul.mubr.msk.f32.gmra.mrb[4].mxu1 %vm488_vm2, %v5187_v54 }
 0x244   : > { %3576 = vmatprep.mubr.msk.f32.mxu1 %vm488_vm2, %v5189_v55 }
 0x247   : > { %3577 = vmatmul.mubr.msk.f32.gmra.mrb[6].mxu1 %vm488_vm2, %v5195_v56 }
 0x248   : > { %3579 = vmatprep.mubr.msk.f32.mxu1 %vm488_vm2, %v5197_v57 }
 0x24b   : > { %3580 = vmatmul.mubr.msk.f32.gmra.mrb[8].mxu1 %vm488_vm2, %v5203_v58 }
 0x24c   : > { %3582 = vmatprep.mubr.msk.f32.mxu1 %vm488_vm2, %v5205_v59 }
 0x24f   : > { %3583 = vmatmul.mubr.msk.f32.gmra.mrb[10].mxu1 %vm488_vm2, %v5211_v60 }
 0x250   : > { %3585 = vmatprep.mubr.msk.f32.mxu1 %vm488_vm2, %v5213_v61 }
 0x253   : > { %3586 = vmatmul.mubr.msk.f32.gmra.mrb[12].mxu1 %vm488_vm2, %v5219_v62 }
 0x254   : > { %3588 = vmatprep.mubr.msk.f32.mxu1 %vm488_vm2, %v5221_v63 }
 0x257   : > { %3589 = vmatmul.mubr.msk.f32.gmra.mrb[14].mxu1 %vm488_vm2, %v5227_v0 }
 0x258   : > { %3623 = vmatprep.mubr.f32.mxu1 %v5159_v26 }
 0x30e   : > { %v3569_v1 = vpop.f32.mrb[0].mxu1 }
 0x30f   : > { %v824_v2 = vmax.f32 %v3569_v1, 1e-30  ;;  %v744_v3 = vpop.f32.mrb[1].mxu1 }
 0x310   : > { %v823_v4 = vmax.f32 %v744_v3, 1e-30 }
 0x311   : > { %4497 = vrcp.f32 %v824_v2 }
 0x312   : > { %4499 = vrcp.f32 %v823_v4  ;;  %v3572_v5 = vpop.f32.mrb[2].mxu1 }
 0x313   : > { %v826_v6 = vmax.f32 %v3572_v5, 1e-30  ;;  %v754_v7 = vpop.f32.mrb[3].mxu1 }
 0x314   : > { %v825_v8 = vmax.f32 %v754_v7, 1e-30 }
 0x315   : > { %4501 = vrcp.f32 %v826_v6 }
 0x316   : > { %4503 = vrcp.f32 %v825_v8  ;;  %v3575_v9 = vpop.f32.mrb[4].mxu1 }
 0x317   : > { %v828_v10 = vmax.f32 %v3575_v9, 1e-30  ;;  %v764_v11 = vpop.f32.mrb[5].mxu1 }
 0x318   : > { %v827_v12 = vmax.f32 %v764_v11, 1e-30 }
 0x319   : > { %4505 = vrcp.f32 %v828_v10 }
 0x31a   : > { %4507 = vrcp.f32 %v827_v12  ;;  %v3578_v13 = vpop.f32.mrb[6].mxu1 }
 0x31b   : > { %v4498_v14 = vpop.eup %4497  ;;  %v830_v15 = vmax.f32 %v3578_v13, 1e-30  ;;  %v774_v16 = vpop.f32.mrb[7].mxu1 }
 0x31c   : > { %v4500_v17 = vpop.eup %4499  ;;  %v856_v18 = vmul.f32 %v4498_v14, %v824_v2  ;;  %v829_v19 = vmax.f32 %v774_v16, 1e-30 }
 0x31d   : > { %v855_v20 = vmul.f32 %v4500_v17, %v823_v4  ;;  %4509 = vrcp.f32 %v830_v15 }
 0x31e   : > { %v872_v21 = vsub.f32 2.0, %v856_v18  ;;  %4511 = vrcp.f32 %v829_v19  ;;  %v3581_v22 = vpop.f32.mrb[8].mxu1 }
 0x31f   : > { %v4502_v23 = vpop.eup %4501  ;;  %v871_v24 = vsub.f32 2.0, %v855_v20  ;;  %v832_v25 = vmax.f32 %v3581_v22, 1e-30  ;;  %v784_v27 = vpop.f32.mrb[9].mxu1 }
 0x320   : > { %v4504_v28 = vpop.eup %4503  ;;  %v888_v29 = vmul.f32 %v4498_v14, %v872_v21  ;;  %v858_v30 = vmul.f32 %v4502_v23, %v826_v6  ;;  %v831_v31 = vmax.f32 %v784_v27, 1e-30 }
 0x321   : > { %v887_v32 = vmul.f32 %v4500_v17, %v871_v24  ;;  %v857_v33 = vmul.f32 %v4504_v28, %v825_v8  ;;  %4513 = vrcp.f32 %v832_v25 }
 0x322   : > { %v874_v34 = vsub.f32 2.0, %v858_v30  ;;  %4515 = vrcp.f32 %v831_v31  ;;  %v3584_v37 = vpop.f32.mrb[10].mxu1 }
 0x323   : > { %v4506_v38 = vpop.eup %4505  ;;  %v873_v39 = vsub.f32 2.0, %v857_v33  ;;  %v834_v40 = vmax.f32 %v3584_v37, 1e-30  ;;  %v794_v41 = vpop.f32.mrb[11].mxu1  ;;  %v4094_v42 = vpack.c.bf16 %v888_v29, %v887_v32 }
 0x324   : > { %v4508_v43 = vpop.eup %4507  ;;  %v890_v44 = vmul.f32 %v4502_v23, %v874_v34  ;;  %v860_v45 = vmul.f32 %v4506_v38, %v828_v10  ;;  %v833_v46 = vmax.f32 %v794_v41, 1e-30 }
 0x325   : > { %v889_v47 = vmul.f32 %v4504_v28, %v873_v39  ;;  %v859_v48 = vmul.f32 %v4508_v43, %v827_v12  ;;  %4517 = vrcp.f32 %v834_v40  ;;  %4095 = vmatprep.subr.bf16.mxu1 %v4094_v42 }
 0x326   : > { %v876_v49 = vsub.f32 2.0, %v860_v45  ;;  %4519 = vrcp.f32 %v833_v46  ;;  %v3587_v1 = vpop.f32.mrb[12].mxu1  ;;  %4097 = vmatpush3.bf16.msra.mxu1 %v4094_v42 }
 0x327   : > { %v4510_v2 = vpop.eup %4509  ;;  %v875_v3 = vsub.f32 2.0, %v859_v48  ;;  %v836_v4 = vmax.f32 %v3587_v1, 1e-30  ;;  %v804_v5 = vpop.f32.mrb[13].mxu1  ;;  %v4098_v6 = vpack.c.bf16 %v890_v44, %v889_v47 }
 0x328   : > { %v4512_v7 = vpop.eup %4511  ;;  %v892_v8 = vmul.f32 %v4506_v38, %v876_v49  ;;  %v862_v9 = vmul.f32 %v4510_v2, %v830_v15  ;;  %v835_v11 = vmax.f32 %v804_v5, 1e-30 }
 0x329   : > { %v891_v13 = vmul.f32 %v4508_v43, %v875_v3  ;;  %v861_v10 = vmul.f32 %v4512_v7, %v829_v19  ;;  %4521 = vrcp.f32 %v836_v4  ;;  %4099 = vmatprep.subr.bf16.mxu1 %v4098_v6 }
 0x32a   : > { %v878_v12 = vsub.f32 2.0, %v862_v9  ;;  %4523 = vrcp.f32 %v835_v11  ;;  %v3590_v14 = vpop.f32.mrb[14].mxu1  ;;  %4101 = vmatpush3.bf16.msra.mxu1 %v4098_v6 }
 0x32b   : > { %v4514_v16 = vpop.eup %4513  ;;  %v877_v17 = vsub.f32 2.0, %v861_v10  ;;  %v838_v18 = vmax.f32 %v3590_v14, 1e-30  ;;  %v814_v20 = vpop.f32.mrb[15].mxu1  ;;  %v4102_v21 = vpack.c.bf16 %v892_v8, %v891_v13 }
 0x32c   : > { %v4516_v22 = vpop.eup %4515  ;;  %v894_v23 = vmul.f32 %v4510_v2, %v878_v12  ;;  %v864_v24 = vmul.f32 %v4514_v16, %v832_v25  ;;  %v837_v27 = vmax.f32 %v814_v20, 1e-30 }
 0x32d   : > { %v893_v28 = vmul.f32 %v4512_v7, %v877_v17  ;;  %v863_v15 = vmul.f32 %v4516_v22, %v831_v31  ;;  %4525 = vrcp.f32 %v838_v18  ;;  %4103 = vmatprep.subr.bf16.mxu1 %v4102_v21 }
 0x32e   : > { %v880_v19 = vsub.f32 2.0, %v864_v24  ;;  %4527 = vrcp.f32 %v837_v27  ;;  %4105 = vmatpush3.bf16.msra.mxu1 %v4102_v21 }
 0x32f   : > { %v4518_v29 = vpop.eup %4517  ;;  %v879_v30 = vsub.f32 2.0, %v863_v15  ;;  %v4106_v32 = vpack.c.bf16 %v894_v23, %v893_v28 }
 0x330   : > { %v4520_v33 = vpop.eup %4519  ;;  %v896_v34 = vmul.f32 %v4514_v16, %v880_v19  ;;  %v866_v37 = vmul.f32 %v4518_v29, %v834_v40 }
 0x331   : > { %v895_v38 = vmul.f32 %v4516_v22, %v879_v30  ;;  %v865_v39 = vmul.f32 %v4520_v33, %v833_v46  ;;  %4107 = vmatprep.subr.bf16.mxu1 %v4106_v32 }
 0x332   : > { %v882_v41 = vsub.f32 2.0, %v866_v37  ;;  %4109 = vmatpush3.bf16.msra.mxu1 %v4106_v32 }
 0x333   : > { %v4522_v25 = vpop.eup %4521  ;;  %v881_v42 = vsub.f32 2.0, %v865_v39  ;;  %v4110_v43 = vpack.c.bf16 %v896_v34, %v895_v38 }
 0x334   : > { %v4524_v31 = vpop.eup %4523  ;;  %v898_v44 = vmul.f32 %v4518_v29, %v882_v41  ;;  %v868_v45 = vmul.f32 %v4522_v25, %v836_v4 }
 0x335   : > { %v897_v47 = vmul.f32 %v4520_v33, %v881_v42  ;;  %v867_v48 = vmul.f32 %v4524_v31, %v835_v11  ;;  %4111 = vmatprep.subr.bf16.mxu1 %v4110_v43 }
 0x336   : > { %v884_v49 = vsub.f32 2.0, %v868_v45  ;;  %4113 = vmatpush3.bf16.msra.mxu1 %v4110_v43 }
 0x337   : > { %v4526_v1 = vpop.eup %4525  ;;  %v883_v2 = vsub.f32 2.0, %v867_v48  ;;  %v4114_v3 = vpack.c.bf16 %v898_v44, %v897_v47 }
 0x338   : > { %v4528_v40 = vpop.eup %4527  ;;  %v900_v5 = vmul.f32 %v4522_v25, %v884_v49  ;;  %v870_v46 = vmul.f32 %v4526_v1, %v838_v18 }
 0x339   : > { %v899_v6 = vmul.f32 %v4524_v31, %v883_v2  ;;  %v869_v7 = vmul.f32 %v4528_v40, %v837_v27  ;;  %4115 = vmatprep.subr.bf16.mxu1 %v4114_v3 }
 0x33a   : > { %v886_v8 = vsub.f32 2.0, %v870_v46  ;;  %4117 = vmatpush3.bf16.msra.mxu1 %v4114_v3 }
 0x33b   : > { %v885_v9 = vsub.f32 2.0, %v869_v7  ;;  %v4118_v13 = vpack.c.bf16 %v900_v5, %v899_v6 }
 0x33c   : > { %v902_v10 = vmul.f32 %v4526_v1, %v886_v8 }
 0x33d   : > { %v901_v4 = vmul.f32 %v4528_v40, %v885_v9  ;;  %4119 = vmatprep.subr.bf16.mxu1 %v4118_v13 }
 0x33e   : > { %4121 = vmatpush3.bf16.msra.mxu1 %v4118_v13 }
 0x33f   : > { %v4122_v11 = vpack.c.bf16 %v902_v10, %v901_v4 }
 0x341   : > { %4123 = vmatprep.subr.bf16.mxu1 %v4122_v11 }
 0x342   : > { %4125 = vmatpush3.bf16.msra.mxu1 %v4122_v11 }
 0x345   : > { %3624 = vmatmul.mubr.f32.vlgmr.msra.gmra.mrb[16].mxu1 %v5162_v35 }
 0x346   : > { %3693 = vmatprep.mubr.msk.f32.mxu1 %vm488_vm2, %v5165_v36 }
 0x418   : > { %v3625_v12 = vpop.f32.mrb[16].mxu1 }
 0x419   : > { %v979_v14 = vmax.f32 %v3625_v12, 1e-30  ;;  %v969_v16 = vpop.f32.mrb[17].mxu1 }
 0x41a   : > { %v978_v17 = vmax.f32 %v969_v16, 1e-30 }
 0x41b   : > { %4529 = vrcp.f32 %v979_v14 }
 0x41c   : > { %4531 = vrcp.f32 %v978_v17 }
 0x425   : > { %v4530_v18 = vpop.eup %4529 }
 0x426   : > { %v4532_v20 = vpop.eup %4531  ;;  %v983_v21 = vmul.f32 %v4530_v18, %v979_v14 }
 0x427   : > { %v982_v22 = vmul.f32 %v4532_v20, %v978_v17 }
 0x428   : > { %v985_v23 = vsub.f32 2.0, %v983_v21 }
 0x429   : > { %v984_v24 = vsub.f32 2.0, %v982_v22 }
 0x42a   : > { %v987_v27 = vmul.f32 %v4530_v18, %v985_v23 }
 0x42b   : > { %v986_v28 = vmul.f32 %v4532_v20, %v984_v24 }
 0x42d   : > { %v4126_v15 = vpack.c.bf16 %v987_v27, %v986_v28 }
 0x42f   : > { %4127 = vmatprep.subr.bf16.mxu0 %v4126_v15 }
 0x430   : > { %4129 = vmatpush3.bf16.msra.mxu0 %v4126_v15 }
 0x433   : > { %3631 = vmatmul.mubr.msk.f32.vlgmr.msra.gmra.mrb[2].mxu0 %vm488_vm2, %v5171_v50 }
 0x434   : > { %3633 = vmatprep.mubr.msk.f32.mxu0 %vm488_vm2, %v5173_v51 }
 0x437   : > { %3634 = vmatmul.mubr.msk.f32.gmra.mrb[4].mxu0 %vm488_vm2, %v5179_v52 }
 0x438   : > { %3636 = vmatprep.mubr.msk.f32.mxu0 %vm488_vm2, %v5181_v53 }
 0x43b   : > { %3637 = vmatmul.mubr.msk.f32.gmra.mrb[6].mxu0 %vm488_vm2, %v5187_v54 }
 0x43c   : > { %3639 = vmatprep.mubr.msk.f32.mxu0 %vm488_vm2, %v5189_v55 }
 0x43f   : > { %3640 = vmatmul.mubr.msk.f32.gmra.mrb[8].mxu0 %vm488_vm2, %v5195_v56 }
 0x440   : > { %3642 = vmatprep.mubr.msk.f32.mxu0 %vm488_vm2, %v5197_v57 }
 0x443   : > { %3643 = vmatmul.mubr.msk.f32.gmra.mrb[10].mxu0 %vm488_vm2, %v5203_v58 }
 0x444   : > { %3645 = vmatprep.mubr.msk.f32.mxu0 %vm488_vm2, %v5205_v59 }
 0x447   : > { %3646 = vmatmul.mubr.msk.f32.gmra.mrb[12].mxu0 %vm488_vm2, %v5211_v60 }
 0x448   : > { %3648 = vmatprep.mubr.msk.f32.mxu0 %vm488_vm2, %v5213_v61 }
 0x44b   : > { %3649 = vmatmul.mubr.msk.f32.gmra.mrb[14].mxu0 %vm488_vm2, %v5219_v62 }
 0x44c   : > { %3651 = vmatprep.mubr.msk.f32.mxu0 %vm488_vm2, %v5221_v63 }
 0x44f   : > { %3652 = vmatmul.mubr.msk.f32.gmra.mrb[16].mxu0 %vm488_vm2, %v5227_v0 }
 0x450   : > { %3686 = vmatprep.mubr.f32.mxu0 %v5159_v26 }
 0x506   : > { %v3632_v19 = vpop.f32.mrb[2].mxu0 }
 0x507   : > { %v1134_v29 = vmax.f32 %v3632_v19, 1e-30  ;;  %v1054_v30 = vpop.f32.mrb[3].mxu0 }
 0x508   : > { %v1133_v32 = vmax.f32 %v1054_v30, 1e-30 }
 0x509   : > { %4533 = vrcp.f32 %v1134_v29 }
 0x50a   : > { %4535 = vrcp.f32 %v1133_v32  ;;  %v3635_v33 = vpop.f32.mrb[4].mxu0 }
 0x50b   : > { %v1136_v34 = vmax.f32 %v3635_v33, 1e-30  ;;  %v1064_v37 = vpop.f32.mrb[5].mxu0 }
 0x50c   : > { %v1135_v38 = vmax.f32 %v1064_v37, 1e-30 }
 0x50d   : > { %4537 = vrcp.f32 %v1136_v34 }
 0x50e   : > { %4539 = vrcp.f32 %v1135_v38  ;;  %v3638_v39 = vpop.f32.mrb[6].mxu0 }
 0x50f   : > { %v1138_v41 = vmax.f32 %v3638_v39, 1e-30  ;;  %v1074_v25 = vpop.f32.mrb[7].mxu0 }
 0x510   : > { %v1137_v42 = vmax.f32 %v1074_v25, 1e-30 }
 0x511   : > { %4541 = vrcp.f32 %v1138_v41 }
 0x512   : > { %4543 = vrcp.f32 %v1137_v42  ;;  %v3641_v43 = vpop.f32.mrb[8].mxu0 }
 0x513   : > { %v4534_v31 = vpop.eup %4533  ;;  %v1140_v44 = vmax.f32 %v3641_v43, 1e-30  ;;  %v1084_v45 = vpop.f32.mrb[9].mxu0 }
 0x514   : > { %v4536_v47 = vpop.eup %4535  ;;  %v1166_v48 = vmul.f32 %v4534_v31, %v1134_v29  ;;  %v1139_v49 = vmax.f32 %v1084_v45, 1e-30 }
 0x515   : > { %v1165_v1 = vmul.f32 %v4536_v47, %v1133_v32  ;;  %4545 = vrcp.f32 %v1140_v44 }
 0x516   : > { %v1182_v2 = vsub.f32 2.0, %v1166_v48  ;;  %4547 = vrcp.f32 %v1139_v49  ;;  %v3644_v3 = vpop.f32.mrb[10].mxu0 }
 0x517   : > { %v4538_v40 = vpop.eup %4537  ;;  %v1181_v5 = vsub.f32 2.0, %v1165_v1  ;;  %v1142_v46 = vmax.f32 %v3644_v3, 1e-30  ;;  %v1094_v6 = vpop.f32.mrb[11].mxu0 }
 0x518   : > { %v4540_v7 = vpop.eup %4539  ;;  %v1198_v8 = vmul.f32 %v4534_v31, %v1182_v2  ;;  %v1168_v9 = vmul.f32 %v4538_v40, %v1136_v34  ;;  %v1141_v13 = vmax.f32 %v1094_v6, 1e-30 }
 0x519   : > { %v1197_v10 = vmul.f32 %v4536_v47, %v1181_v5  ;;  %v1167_v4 = vmul.f32 %v4540_v7, %v1135_v38  ;;  %4549 = vrcp.f32 %v1142_v46 }
 0x51a   : > { %v1184_v11 = vsub.f32 2.0, %v1168_v9  ;;  %4551 = vrcp.f32 %v1141_v13  ;;  %v3647_v12 = vpop.f32.mrb[12].mxu0 }
 0x51b   : > { %v4542_v14 = vpop.eup %4541  ;;  %v1183_v16 = vsub.f32 2.0, %v1167_v4  ;;  %v1144_v17 = vmax.f32 %v3647_v12, 1e-30  ;;  %v1104_v18 = vpop.f32.mrb[13].mxu0  ;;  %v4130_v20 = vpack.c.bf16 %v1198_v8, %v1197_v10 }
 0x51c   : > { %v4544_v21 = vpop.eup %4543  ;;  %v1200_v22 = vmul.f32 %v4538_v40, %v1184_v11  ;;  %v1170_v23 = vmul.f32 %v4542_v14, %v1138_v41  ;;  %v1143_v24 = vmax.f32 %v1104_v18, 1e-30 }
 0x51d   : > { %v1199_v27 = vmul.f32 %v4540_v7, %v1183_v16  ;;  %v1169_v28 = vmul.f32 %v4544_v21, %v1137_v42  ;;  %4553 = vrcp.f32 %v1144_v17  ;;  %4131 = vmatprep.subr.bf16.mxu0 %v4130_v20 }
 0x51e   : > { %v1186_v15 = vsub.f32 2.0, %v1170_v23  ;;  %4555 = vrcp.f32 %v1143_v24  ;;  %v3650_v19 = vpop.f32.mrb[14].mxu0  ;;  %4133 = vmatpush3.bf16.msra.mxu0 %v4130_v20 }
 0x51f   : > { %v4546_v29 = vpop.eup %4545  ;;  %v1185_v30 = vsub.f32 2.0, %v1169_v28  ;;  %v1146_v32 = vmax.f32 %v3650_v19, 1e-30  ;;  %v1114_v33 = vpop.f32.mrb[15].mxu0  ;;  %v4134_v34 = vpack.c.bf16 %v1200_v22, %v1199_v27 }
 0x520   : > { %v4548_v37 = vpop.eup %4547  ;;  %v1202_v38 = vmul.f32 %v4542_v14, %v1186_v15  ;;  %v1172_v39 = vmul.f32 %v4546_v29, %v1140_v44  ;;  %v1145_v25 = vmax.f32 %v1114_v33, 1e-30 }
 0x521   : > { %v1201_v43 = vmul.f32 %v4544_v21, %v1185_v30  ;;  %v1171_v41 = vmul.f32 %v4548_v37, %v1139_v49  ;;  %4557 = vrcp.f32 %v1146_v32  ;;  %4135 = vmatprep.subr.bf16.mxu0 %v4134_v34 }
 0x522   : > { %v1188_v42 = vsub.f32 2.0, %v1172_v39  ;;  %4559 = vrcp.f32 %v1145_v25  ;;  %v3653_v31 = vpop.f32.mrb[16].mxu0  ;;  %4137 = vmatpush3.bf16.msra.mxu0 %v4134_v34 }
 0x523   : > { %v4550_v45 = vpop.eup %4549  ;;  %v1187_v47 = vsub.f32 2.0, %v1171_v41  ;;  %v1148_v48 = vmax.f32 %v3653_v31, 1e-30  ;;  %v1124_v1 = vpop.f32.mrb[17].mxu0  ;;  %v4138_v2 = vpack.c.bf16 %v1202_v38, %v1201_v43 }
 0x524   : > { %v4552_v3 = vpop.eup %4551  ;;  %v1204_v40 = vmul.f32 %v4546_v29, %v1188_v42  ;;  %v1174_v5 = vmul.f32 %v4550_v45, %v1142_v46  ;;  %v1147_v6 = vmax.f32 %v1124_v1, 1e-30 }
 0x525   : > { %v1203_v7 = vmul.f32 %v4548_v37, %v1187_v47  ;;  %v1173_v44 = vmul.f32 %v4552_v3, %v1141_v13  ;;  %4561 = vrcp.f32 %v1148_v48  ;;  %4139 = vmatprep.subr.bf16.mxu0 %v4138_v2 }
 0x526   : > { %v1190_v49 = vsub.f32 2.0, %v1174_v5  ;;  %4563 = vrcp.f32 %v1147_v6  ;;  %4141 = vmatpush3.bf16.msra.mxu0 %v4138_v2 }
 0x527   : > { %v4554_v8 = vpop.eup %4553  ;;  %v1189_v9 = vsub.f32 2.0, %v1173_v44  ;;  %v4142_v10 = vpack.c.bf16 %v1204_v40, %v1203_v7 }
 0x528   : > { %v4556_v4 = vpop.eup %4555  ;;  %v1206_v11 = vmul.f32 %v4550_v45, %v1190_v49  ;;  %v1176_v12 = vmul.f32 %v4554_v8, %v1144_v17 }
 0x529   : > { %v1205_v14 = vmul.f32 %v4552_v3, %v1189_v9  ;;  %v1175_v16 = vmul.f32 %v4556_v4, %v1143_v24  ;;  %4143 = vmatprep.subr.bf16.mxu0 %v4142_v10 }
 0x52a   : > { %v1192_v18 = vsub.f32 2.0, %v1176_v12  ;;  %4145 = vmatpush3.bf16.msra.mxu0 %v4142_v10 }
 0x52b   : > { %v4558_v46 = vpop.eup %4557  ;;  %v1191_v20 = vsub.f32 2.0, %v1175_v16  ;;  %v4146_v21 = vpack.c.bf16 %v1206_v11, %v1205_v14 }
 0x52c   : > { %v4560_v13 = vpop.eup %4559  ;;  %v1208_v22 = vmul.f32 %v4554_v8, %v1192_v18  ;;  %v1178_v23 = vmul.f32 %v4558_v46, %v1146_v32 }
 0x52d   : > { %v1207_v27 = vmul.f32 %v4556_v4, %v1191_v20  ;;  %v1177_v28 = vmul.f32 %v4560_v13, %v1145_v25  ;;  %4147 = vmatprep.subr.bf16.mxu0 %v4146_v21 }
 0x52e   : > { %v1194_v15 = vsub.f32 2.0, %v1178_v23  ;;  %4149 = vmatpush3.bf16.msra.mxu0 %v4146_v21 }
 0x52f   : > { %v4562_v19 = vpop.eup %4561  ;;  %v1193_v29 = vsub.f32 2.0, %v1177_v28  ;;  %v4150_v30 = vpack.c.bf16 %v1208_v22, %v1207_v27 }
 0x530   : > { %v4564_v17 = vpop.eup %4563  ;;  %v1210_v33 = vmul.f32 %v4558_v46, %v1194_v15  ;;  %v1180_v24 = vmul.f32 %v4562_v19, %v1148_v48 }
 0x531   : > { %v1209_v34 = vmul.f32 %v4560_v13, %v1193_v29  ;;  %v1179_v37 = vmul.f32 %v4564_v17, %v1147_v6  ;;  %4151 = vmatprep.subr.bf16.mxu0 %v4150_v30 }
 0x532   : > { %v1196_v38 = vsub.f32 2.0, %v1180_v24  ;;  %4153 = vmatpush3.bf16.msra.mxu0 %v4150_v30 }
 0x533   : > { %v1195_v39 = vsub.f32 2.0, %v1179_v37  ;;  %v4154_v43 = vpack.c.bf16 %v1210_v33, %v1209_v34 }
 0x534   : > { %v1212_v41 = vmul.f32 %v4562_v19, %v1196_v38 }
 0x535   : > { %v1211_v32 = vmul.f32 %v4564_v17, %v1195_v39  ;;  %4155 = vmatprep.subr.bf16.mxu0 %v4154_v43 }
 0x536   : > { %4157 = vmatpush3.bf16.msra.mxu0 %v4154_v43 }
 0x537   : > { %v4158_v25 = vpack.c.bf16 %v1212_v41, %v1211_v32 }
 0x539   : > { %4159 = vmatprep.subr.bf16.mxu0 %v4158_v25 }
 0x53a   : > { %4161 = vmatpush3.bf16.msra.mxu0 %v4158_v25 }
 0x53d   : > { %3687 = vmatmul.mubr.f32.vlgmr.msra.gmra.mrb[18].mxu0 %v5162_v35 }
 0x53e   : > { %3756 = vmatprep.mubr.msk.f32.mxu0 %vm488_vm2, %v5165_v36 }
 0x610   : > { %v3688_v42 = vpop.f32.mrb[18].mxu0 }
 0x611   : > { %v1289_v31 = vmax.f32 %v3688_v42, 1e-30  ;;  %v1279_v45 = vpop.f32.mrb[19].mxu0 }
 0x612   : > { %v1288_v47 = vmax.f32 %v1279_v45, 1e-30 }
 0x613   : > { %4565 = vrcp.f32 %v1289_v31 }
 0x614   : > { %4567 = vrcp.f32 %v1288_v47 }
 0x61d   : > { %v4566_v48 = vpop.eup %4565 }
 0x61e   : > { %v4568_v1 = vpop.eup %4567  ;;  %v1293_v2 = vmul.f32 %v4566_v48, %v1289_v31 }
 0x61f   : > { %v1292_v3 = vmul.f32 %v4568_v1, %v1288_v47 }
 0x620   : > { %v1295_v40 = vsub.f32 2.0, %v1293_v2 }
 0x621   : > { %v1294_v5 = vsub.f32 2.0, %v1292_v3 }
 0x622   : > { %v1297_v6 = vmul.f32 %v4566_v48, %v1295_v40 }
 0x623   : > { %v1296_v7 = vmul.f32 %v4568_v1, %v1294_v5 }
 0x625   : > { %v4162_v44 = vpack.c.bf16 %v1297_v6, %v1296_v7 }
 0x627   : > { %4163 = vmatprep.subr.bf16.mxu1 %v4162_v44 }
 0x628   : > { %4165 = vmatpush3.bf16.msra.mxu1 %v4162_v44 }
 0x62b   : > { %3694 = vmatmul.mubr.msk.f32.vlgmr.msra.gmra.mrb[18].mxu1 %vm488_vm2, %v5171_v50 }
 0x62c   : > { %3696 = vmatprep.mubr.msk.f32.mxu1 %vm488_vm2, %v5173_v51 }
 0x62f   : > { %3697 = vmatmul.mubr.msk.f32.gmra.mrb[20].mxu1 %vm488_vm2, %v5179_v52 }
 0x630   : > { %3699 = vmatprep.mubr.msk.f32.mxu1 %vm488_vm2, %v5181_v53 }
 0x633   : > { %3700 = vmatmul.mubr.msk.f32.gmra.mrb[22].mxu1 %vm488_vm2, %v5187_v54 }
 0x634   : > { %3702 = vmatprep.mubr.msk.f32.mxu1 %vm488_vm2, %v5189_v55 }
 0x637   : > { %3703 = vmatmul.mubr.msk.f32.gmra.mrb[24].mxu1 %vm488_vm2, %v5195_v56 }
 0x638   : > { %3705 = vmatprep.mubr.msk.f32.mxu1 %vm488_vm2, %v5197_v57 }
 0x63b   : > { %3706 = vmatmul.mubr.msk.f32.gmra.mrb[26].mxu1 %vm488_vm2, %v5203_v58 }
 0x63c   : > { %3708 = vmatprep.mubr.msk.f32.mxu1 %vm488_vm2, %v5205_v59 }
 0x63f   : > { %3709 = vmatmul.mubr.msk.f32.gmra.mrb[28].mxu1 %vm488_vm2, %v5211_v60 }
 0x640   : > { %3711 = vmatprep.mubr.msk.f32.mxu1 %vm488_vm2, %v5213_v61 }
 0x643   : > { %3712 = vmatmul.mubr.msk.f32.gmra.mrb[30].mxu1 %vm488_vm2, %v5219_v62 }
 0x644   : > { %3714 = vmatprep.mubr.msk.f32.mxu1 %vm488_vm2, %v5221_v63 }
 0x647   : > { %3715 = vmatmul.mubr.msk.f32.gmra.mrb[32].mxu1 %vm488_vm2, %v5227_v0 }
 0x648   : > { %3749 = vmatprep.mubr.f32.mxu1 %v5159_v26 }
 0x6fe   : > { %v3695_v35 = vpop.f32.mrb[18].mxu1 }
 0x6ff   : > { %v1444_v36 = vmax.f32 %v3695_v35, 1e-30  ;;  %v1364_v50 = vpop.f32.mrb[19].mxu1 }
 0x700   : > { %v1443_v51 = vmax.f32 %v1364_v50, 1e-30 }
 0x701   : > { %4569 = vrcp.f32 %v1444_v36 }
 0x702   : > { %4571 = vrcp.f32 %v1443_v51  ;;  %v3698_v52 = vpop.f32.mrb[20].mxu1 }
 0x703   : > { %v1446_v53 = vmax.f32 %v3698_v52, 1e-30  ;;  %v1374_v54 = vpop.f32.mrb[21].mxu1 }
 0x704   : > { %v1445_v55 = vmax.f32 %v1374_v54, 1e-30 }
 0x705   : > { %4573 = vrcp.f32 %v1446_v53 }
 0x706   : > { %4575 = vrcp.f32 %v1445_v55  ;;  %v3701_v56 = vpop.f32.mrb[22].mxu1 }
 0x707   : > { %v1448_v57 = vmax.f32 %v3701_v56, 1e-30  ;;  %v1384_v58 = vpop.f32.mrb[23].mxu1 }
 0x708   : > { %v1447_v61 = vmax.f32 %v1384_v58, 1e-30 }
 0x709   : > { %4577 = vrcp.f32 %v1448_v57 }
 0x70a   : > { %4579 = vrcp.f32 %v1447_v61  ;;  %v3704_v63 = vpop.f32.mrb[24].mxu1 }
 0x70b   : > { %v4570_v26 = vpop.eup %4569  ;;  %v1450_v49 = vmax.f32 %v3704_v63, 1e-30  ;;  %v1394_v8 = vpop.f32.mrb[25].mxu1 }
 0x70c   : > { %v4572_v9 = vpop.eup %4571  ;;  %v1476_v10 = vmul.f32 %v4570_v26, %v1444_v36  ;;  %v1449_v4 = vmax.f32 %v1394_v8, 1e-30 }
 0x70d   : > { %v1475_v11 = vmul.f32 %v4572_v9, %v1443_v51  ;;  %4581 = vrcp.f32 %v1450_v49 }
 0x70e   : > { %v1492_v12 = vsub.f32 2.0, %v1476_v10  ;;  %4583 = vrcp.f32 %v1449_v4  ;;  %v3707_v14 = vpop.f32.mrb[26].mxu1 }
 0x70f   : > { %v4574_v16 = vpop.eup %4573  ;;  %v1491_v18 = vsub.f32 2.0, %v1475_v11  ;;  %v1452_v46 = vmax.f32 %v3707_v14, 1e-30  ;;  %v1404_v20 = vpop.f32.mrb[27].mxu1 }
 0x710   : > { %v4576_v21 = vpop.eup %4575  ;;  %v1508_v13 = vmul.f32 %v4570_v26, %v1492_v12  ;;  %v1478_v22 = vmul.f32 %v4574_v16, %v1446_v53  ;;  %v1451_v23 = vmax.f32 %v1404_v20, 1e-30 }
 0x711   : > { %v1507_v27 = vmul.f32 %v4572_v9, %v1491_v18  ;;  %v1477_v28 = vmul.f32 %v4576_v21, %v1445_v55  ;;  %4585 = vrcp.f32 %v1452_v46 }
 0x712   : > { %v1494_v15 = vsub.f32 2.0, %v1478_v22  ;;  %4587 = vrcp.f32 %v1451_v23  ;;  %v3710_v19 = vpop.f32.mrb[28].mxu1 }
 0x713   : > { %v4578_v29 = vpop.eup %4577  ;;  %v1493_v30 = vsub.f32 2.0, %v1477_v28  ;;  %v1454_v17 = vmax.f32 %v3710_v19, 1e-30  ;;  %v1414_v33 = vpop.f32.mrb[29].mxu1  ;;  %v4166_v24 = vpack.c.bf16 %v1508_v13, %v1507_v27 }
 0x714   : > { %v4580_v34 = vpop.eup %4579  ;;  %v1510_v37 = vmul.f32 %v4574_v16, %v1494_v15  ;;  %v1480_v38 = vmul.f32 %v4578_v29, %v1448_v57  ;;  %v1453_v39 = vmax.f32 %v1414_v33, 1e-30 }
 0x715   : > { %v1509_v43 = vmul.f32 %v4576_v21, %v1493_v30  ;;  %v1479_v41 = vmul.f32 %v4580_v34, %v1447_v61  ;;  %4589 = vrcp.f32 %v1454_v17  ;;  %4167 = vmatprep.subr.bf16.mxu1 %v4166_v24 }
 0x716   : > { %v1496_v32 = vsub.f32 2.0, %v1480_v38  ;;  %4591 = vrcp.f32 %v1453_v39  ;;  %v3713_v25 = vpop.f32.mrb[30].mxu1  ;;  %4169 = vmatpush3.bf16.msra.mxu1 %v4166_v24 }
 0x717   : > { %v4582_v42 = vpop.eup %4581  ;;  %v1495_v31 = vsub.f32 2.0, %v1479_v41  ;;  %v1456_v45 = vmax.f32 %v3713_v25, 1e-30  ;;  %v1424_v47 = vpop.f32.mrb[31].mxu1  ;;  %v4170_v48 = vpack.c.bf16 %v1510_v37, %v1509_v43  ;;  %v4637_v41 = vld [vmem:[#allocation4 + $0x8] sm:$0xff] }
 0x718   : > { %v4584_v1 = vpop.eup %4583  ;;  %v1512_v2 = vmul.f32 %v4578_v29, %v1496_v32  ;;  %v1482_v3 = vmul.f32 %v4582_v42, %v1450_v49  ;;  %v1455_v40 = vmax.f32 %v1424_v47, 1e-30 }
 0x719   : > { %v1511_v5 = vmul.f32 %v4580_v34, %v1495_v31  ;;  %v1481_v6 = vmul.f32 %v4584_v1, %v1449_v4  ;;  %4593 = vrcp.f32 %v1456_v45  ;;  %4171 = vmatprep.subr.bf16.mxu1 %v4170_v48 }
 0x71a   : > { %v1498_v7 = vsub.f32 2.0, %v1482_v3  ;;  %4595 = vrcp.f32 %v1455_v40  ;;  %v3716_v44 = vpop.f32.mrb[32].mxu1  ;;  %4173 = vmatpush3.bf16.msra.mxu1 %v4170_v48 }
 0x71b   : > { %v4586_v35 = vpop.eup %4585  ;;  %v1497_v36 = vsub.f32 2.0, %v1481_v6  ;;  %v1458_v50 = vmax.f32 %v3716_v44, 1e-30  ;;  %v1434_v51 = vpop.f32.mrb[33].mxu1  ;;  %v4174_v52 = vpack.c.bf16 %v1512_v2, %v1511_v5  ;;  %v4640_v44 = vld [vmem:[#allocation2 + $0x60] sm:$0xff] }
 0x71c   : > { %v4588_v53 = vpop.eup %4587  ;;  %v1514_v54 = vmul.f32 %v4582_v42, %v1498_v7  ;;  %v1484_v55 = vmul.f32 %v4586_v35, %v1452_v46  ;;  %v1457_v56 = vmax.f32 %v1434_v51, 1e-30  ;;  %v4639_v7 = vld [vmem:[#allocation2 + $0x10] sm:$0xff]  ;;  %v4644_v51 = vld [vmem:[#allocation2 + $0x28] sm:$0xff] }
 0x71d   : > { %v1513_v57 = vmul.f32 %v4584_v1, %v1497_v36  ;;  %v1483_v58 = vmul.f32 %v4588_v53, %v1451_v23  ;;  %4597 = vrcp.f32 %v1458_v50  ;;  %4175 = vmatprep.subr.bf16.mxu1 %v4174_v52  ;;  %v4642_v36 = vld [vmem:[#allocation2 + $0x20] sm:$0xff] }
 0x71e   : > { %v1500_v61 = vsub.f32 2.0, %v1484_v55  ;;  %4599 = vrcp.f32 %v1457_v56  ;;  %4177 = vmatpush3.bf16.msra.mxu1 %v4174_v52  ;;  %v4646_v52 = vld [vmem:[#allocation2 + $0x38] sm:$0xff] }
 0x71f   : > { %v4590_v63 = vpop.eup %4589  ;;  %v1499_v26 = vsub.f32 2.0, %v1483_v58  ;;  %v4178_v49 = vpack.c.bf16 %v1514_v54, %v1513_v57 }
 0x720   : > { %v4592_v8 = vpop.eup %4591  ;;  %v1516_v9 = vmul.f32 %v4586_v35, %v1500_v61  ;;  %v1486_v10 = vmul.f32 %v4590_v63, %v1454_v17  ;;  %v4641_v35 = vld [vmem:[#allocation2 + $0x18] sm:$0xff] }
 0x721   : > { %v1515_v4 = vmul.f32 %v4588_v53, %v1499_v26  ;;  %v1485_v11 = vmul.f32 %v4592_v8, %v1453_v39  ;;  %4179 = vmatprep.subr.bf16.mxu1 %v4178_v49  ;;  %v4647_v53 = vld [vmem:[#allocation2 + $0x40] sm:$0xff] }
 0x722   : > { %v1502_v12 = vsub.f32 2.0, %v1486_v10  ;;  %4181 = vmatpush3.bf16.msra.mxu1 %v4178_v49 }
 0x723   : > { %v4594_v14 = vpop.eup %4593  ;;  %v1501_v16 = vsub.f32 2.0, %v1485_v11  ;;  %v4182_v18 = vpack.c.bf16 %v1516_v9, %v1515_v4 }
 0x724   : > { %v4596_v46 = vpop.eup %4595  ;;  %v1518_v20 = vmul.f32 %v4590_v63, %v1502_v12  ;;  %v1488_v21 = vmul.f32 %v4594_v14, %v1456_v45 }
 0x725   : > { %v1517_v13 = vmul.f32 %v4592_v8, %v1501_v16  ;;  %v1487_v22 = vmul.f32 %v4596_v46, %v1455_v40  ;;  %4183 = vmatprep.subr.bf16.mxu1 %v4182_v18 }
 0x726   : > { %v1504_v23 = vsub.f32 2.0, %v1488_v21  ;;  %4185 = vmatpush3.bf16.msra.mxu1 %v4182_v18 }
 0x727   : > { %v4598_v27 = vpop.eup %4597  ;;  %v1503_v28 = vsub.f32 2.0, %v1487_v22  ;;  %v4186_v15 = vpack.c.bf16 %v1518_v20, %v1517_v13 }
 0x728   : > { %v4600_v19 = vpop.eup %4599  ;;  %v1520_v29 = vmul.f32 %v4594_v14, %v1504_v23  ;;  %v1490_v30 = vmul.f32 %v4598_v27, %v1458_v50  ;;  %v4643_v50 = vld [vmem:[#allocation2 + $0x70] sm:$0xff] }
 0x729   : > { %v1519_v17 = vmul.f32 %v4596_v46, %v1503_v28  ;;  %v1489_v33 = vmul.f32 %v4600_v19, %v1457_v56  ;;  %4187 = vmatprep.subr.bf16.mxu1 %v4186_v15 }
 0x72a   : > { %v1506_v24 = vsub.f32 2.0, %v1490_v30  ;;  %4189 = vmatpush3.bf16.msra.mxu1 %v4186_v15 }
 0x72b   : > { %v1505_v34 = vsub.f32 2.0, %v1489_v33  ;;  %v4190_v37 = vpack.c.bf16 %v1520_v29, %v1519_v17 }
 0x72c   : > { %v1522_v38 = vmul.f32 %v4598_v27, %v1506_v24 }
 0x72d   : > { %v1521_v39 = vmul.f32 %v4600_v19, %v1505_v34  ;;  %4191 = vmatprep.subr.bf16.mxu1 %v4190_v37 }
 0x72e   : > { %4193 = vmatpush3.bf16.msra.mxu1 %v4190_v37 }
 0x72f   : > { %v4194_v43 = vpack.c.bf16 %v1522_v38, %v1521_v39 }
 0x731   : > { %4195 = vmatprep.subr.bf16.mxu1 %v4194_v43 }
 0x732   : > { %4197 = vmatpush3.bf16.msra.mxu1 %v4194_v43 }
 0x735   : > { %3750 = vmatmul.mubr.f32.vlgmr.msra.gmra.mrb[34].mxu1 %v4637_v41 }
 0x736   : > { %3771 = vmatprep.mubr.msk.f32.mxu1 %vm488_vm2, %v5205_v59  ;;  %v4638_v59 = vld [vmem:[#allocation2 + $0x8] sm:$0xff] }
 0x808   : > { %v3751_v32 = vpop.f32.mrb[34].mxu1 }
 0x809   : > { %v1599_v25 = vmax.f32 %v3751_v32, 1e-30  ;;  %v1589_v42 = vpop.f32.mrb[35].mxu1 }
 0x80a   : > { %v1598_v31 = vmax.f32 %v1589_v42, 1e-30 }
 0x80b   : > { %4601 = vrcp.f32 %v1599_v25 }
 0x80c   : > { %4603 = vrcp.f32 %v1598_v31 }
 0x815   : > { %v4602_v45 = vpop.eup %4601 }
 0x816   : > { %v4604_v47 = vpop.eup %4603  ;;  %v1603_v48 = vmul.f32 %v4602_v45, %v1599_v25 }
 0x817   : > { %v1602_v1 = vmul.f32 %v4604_v47, %v1598_v31 }
 0x818   : > { %v1605_v2 = vsub.f32 2.0, %v1603_v48 }
 0x819   : > { %v1604_v3 = vsub.f32 2.0, %v1602_v1 }
 0x81a   : > { %v1607_v40 = vmul.f32 %v4602_v45, %v1605_v2 }
 0x81b   : > { %v1606_v5 = vmul.f32 %v4604_v47, %v1604_v3 }
 0x81d   : > { %v4198_v6 = vpack.c.bf16 %v1607_v40, %v1606_v5 }
 0x81f   : > { %4199 = vmatprep.subr.bf16.mxu0 %v4198_v6  ;;  %4342 = vmatprep.subr.bf16.mxu1 %v4198_v6 }
 0x820   : > { %4201 = vmatpush3.bf16.msra.mxu0 %v4198_v6  ;;  %4343 = vmatpush3.bf16.msra.mxu1 %v4198_v6 }
 0x823   : > { %3757 = vmatmul.mubr.msk.f32.vlgmr.msra.gmra.mrb[20].mxu0 %vm488_vm2, %v4638_v59  ;;  %3772 = vmatmul.mubr.msk.f32.vlgmr.msra.gmra.mrb[36].mxu1 %vm488_vm2, %v5211_v60  ;;  %v4645_v60 = vld [vmem:[#allocation2 + $0x30] sm:$0xff] }
 0x824   : > { %3759 = vmatprep.mubr.msk.f32.mxu0 %vm488_vm2, %v4639_v7  ;;  %3774 = vmatprep.mubr.msk.f32.mxu1 %vm488_vm2, %v4640_v44 }
 0x827   : > { %3760 = vmatmul.mubr.msk.f32.gmra.mrb[22].mxu0 %vm488_vm2, %v4641_v35  ;;  %3775 = vmatmul.mubr.msk.f32.gmra.mrb[38].mxu1 %vm488_vm2, %v5219_v62  ;;  %v4648_v62 = vld [vmem:[#allocation2 + $0x48] sm:$0xff] }
 0x828   : > { %3762 = vmatprep.mubr.msk.f32.mxu0 %vm488_vm2, %v4642_v36  ;;  %3777 = vmatprep.mubr.msk.f32.mxu1 %vm488_vm2, %v4643_v50 }
 0x82b   : > { %3763 = vmatmul.mubr.msk.f32.gmra.mrb[24].mxu0 %vm488_vm2, %v4644_v51  ;;  %3778 = vmatmul.mubr.msk.f32.gmra.mrb[40].mxu1 %vm488_vm2, %v5227_v0 }
 0x82c   : > { %3765 = vmatprep.mubr.msk.f32.mxu0 %vm488_vm2, %v4645_v60 }
 0x82f   : > { %3766 = vmatmul.mubr.msk.f32.gmra.mrb[26].mxu0 %vm488_vm2, %v4646_v52 }
 0x830   : > { %3768 = vmatprep.mubr.msk.f32.mxu0 %vm488_vm2, %v4647_v53 }
 0x833   : > { %3769 = vmatmul.mubr.msk.f32.gmra.mrb[28].mxu0 %vm488_vm2, %v4648_v62 }
 0x8f6   : > { %v3758_v54 = vpop.f32.mrb[20].mxu0  ;;  %v3773_v55 = vpop.f32.mrb[36].mxu1 }
 0x8f7   : > { %v1754_v56 = vmax.f32 %v3758_v54, 1e-30  ;;  %v1764_v57 = vmax.f32 %v3773_v55, 1e-30  ;;  %v1674_v58 = vpop.f32.mrb[21].mxu0  ;;  %v1724_v61 = vpop.f32.mrb[37].mxu1 }
 0x8f8   : > { %v1753_v63 = vmax.f32 %v1674_v58, 1e-30  ;;  %v1763_v0 = vmax.f32 %v1724_v61, 1e-30 }
 0x8f9   : > { %4605 = vrcp.f32 %v1754_v56 }
 0x8fa   : > { %4607 = vrcp.f32 %v1764_v57  ;;  %v3761_v26 = vpop.f32.mrb[22].mxu0  ;;  %v3776_v49 = vpop.f32.mrb[38].mxu1 }
 0x8fb   : > { %4609 = vrcp.f32 %v1753_v63  ;;  %v1756_v8 = vmax.f32 %v3761_v26, 1e-30  ;;  %v1766_v9 = vmax.f32 %v3776_v49, 1e-30  ;;  %v1684_v10 = vpop.f32.mrb[23].mxu0  ;;  %v1734_v4 = vpop.f32.mrb[39].mxu1 }
 0x8fc   : > { %4611 = vrcp.f32 %v1763_v0  ;;  %v1755_v11 = vmax.f32 %v1684_v10, 1e-30  ;;  %v1765_v12 = vmax.f32 %v1734_v4, 1e-30 }
 0x8fd   : > { %4613 = vrcp.f32 %v1756_v8 }
 0x8fe   : > { %4615 = vrcp.f32 %v1766_v9  ;;  %v3764_v14 = vpop.f32.mrb[24].mxu0  ;;  %v3779_v16 = vpop.f32.mrb[40].mxu1 }
 0x8ff   : > { %4617 = vrcp.f32 %v1755_v11  ;;  %v1758_v18 = vmax.f32 %v3764_v14, 1e-30  ;;  %v1768_v46 = vmax.f32 %v3779_v16, 1e-30  ;;  %v1694_v20 = vpop.f32.mrb[25].mxu0  ;;  %v5319_v21 = vpop.f32.mrb[41].mxu1 }
 0x900   : > { %4619 = vrcp.f32 %v1765_v12  ;;  %v1757_v13 = vmax.f32 %v1694_v20, 1e-30  ;;  %v1767_v22 = vmax.f32 %v5319_v21, 1e-30 }
 0x901   : > { %4621 = vrcp.f32 %v1758_v18 }
 0x902   : > { %4623 = vrcp.f32 %v1768_v46  ;;  %v3767_v23 = vpop.f32.mrb[26].mxu0 }
 0x903   : > { %v4606_v27 = vpop.eup %4605  ;;  %4625 = vrcp.f32 %v1757_v13  ;;  %v1760_v28 = vmax.f32 %v3767_v23, 1e-30  ;;  %v1704_v15 = vpop.f32.mrb[27].mxu0 }
 0x904   : > { %v4608_v19 = vpop.eup %4607  ;;  %v1786_v29 = vmul.f32 %v4606_v27, %v1754_v56  ;;  %4627 = vrcp.f32 %v1767_v22  ;;  %v1759_v30 = vmax.f32 %v1704_v15, 1e-30 }
 0x905   : > { %v4610_v17 = vpop.eup %4609  ;;  %v1796_v33 = vmul.f32 %v4608_v19, %v1764_v57  ;;  %4629 = vrcp.f32 %v1760_v28 }
 0x906   : > { %v4612_v24 = vpop.eup %4611  ;;  %v1802_v34 = vsub.f32 2.0, %v1786_v29  ;;  %v1785_v37 = vmul.f32 %v4610_v17, %v1753_v63  ;;  %4631 = vrcp.f32 %v1759_v30  ;;  %v3770_v38 = vpop.f32.mrb[28].mxu0 }
 0x907   : > { %v4614_v39 = vpop.eup %4613  ;;  %v1812_v43 = vsub.f32 2.0, %v1796_v33  ;;  %v1795_v41 = vmul.f32 %v4612_v24, %v1763_v0  ;;  %v1762_v32 = vmax.f32 %v3770_v38, 1e-30  ;;  %v1714_v25 = vpop.f32.mrb[29].mxu0 }
 0x908   : > { %v4616_v42 = vpop.eup %4615  ;;  %v5322_v31 = vmul.f32 %v4606_v27, %v1802_v34   ;;  %v1801_v45 = vsub.f32 2.0, %v1785_v37  ;;  %v1788_v47 = vmul.f32 %v4614_v39, %v1756_v8  ;;  %v1761_v48 = vmax.f32 %v1714_v25, 1e-30 }
 0x909   : > { %v4618_v1 = vpop.eup %4617  ;;  %v5324_v14 = vmul.f32 %v4608_v19, %v1812_v43   ;;  %v1811_v3 = vsub.f32 2.0, %v1795_v41  ;;  %v1798_v40 = vmul.f32 %v4616_v42, %v1766_v9  ;;  %4633 = vrcp.f32 %v1762_v32 }
 0x90a   : > { %v4620_v5 = vpop.eup %4619  ;;  %v5326_v25 = vmul.f32 %v4610_v17, %v1801_v45   ;;  %v1804_v59 = vsub.f32 2.0, %v1788_v47  ;;  %v1787_v7 = vmul.f32 %v4618_v1, %v1755_v11  ;;  %4635 = vrcp.f32 %v1761_v48 }
 0x90b   : > { %v5548_v2 = vmov %v5324_v14  ;;  %v4622_v44 = vpop.eup %4621  ;;  %v5328_v15 = vmul.f32 %v4612_v24, %v1811_v3   ;;  %v1814_v36 = vsub.f32 2.0, %v1798_v40  ;;  %v1797_v50 = vmul.f32 %v4620_v5, %v1765_v12 }
 0x90c   : > { %v5549_v6 = vmov %v5326_v25  ;;  %v4624_v51 = vpop.eup %4623  ;;  %v1820_v60 = vmul.f32 %v4614_v39, %v1804_v59   ;;  %v1803_v52 = vsub.f32 2.0, %v1787_v7  ;;  %v1790_v53 = vmul.f32 %v4622_v44, %v1758_v18  ;;  %v5383_v39 = vld [vmem:[#allocation4] sm:$0xff] (%p5335_p0) }
 0x90d   : > { %v5550_v35 = vmov %v5328_v15  ;;  %v4626_v62 = vpop.eup %4625  ;;  %v5330_v12 = vmul.f32 %v4616_v42, %v1814_v36   ;;  %v1813_v55 = vsub.f32 2.0, %v1797_v50  ;;  %v1800_v56 = vmul.f32 %v4624_v51, %v1768_v46  ;;  %3812 = vmatprep.mubr.f32.mxu0 (%p5335_p0), %v5383_v39  ;;  %v5393_v42 = vld [vmem:[#allocation2] sm:$0xff] (%p5335_p0)  ;;  %v5401_v36 = vld [vmem:[#allocation2 + $0x10] sm:$0xff] (%p5335_p0)  ;;  %v5407_v50 = vld [vmem:[#allocation2 + $0x18] sm:$0xff] (%p5335_p0) }
 0x90e   : > { %v4628_v57 = vpop.eup %4627  ;;  %v1819_v58 = vmul.f32 %v4618_v1, %v1803_v52   ;;  %v1806_v61 = vsub.f32 2.0, %v1790_v53  ;;  %v1789_v63 = vmul.f32 %v4626_v62, %v1757_v13  ;;  %v5568_v24 = vmov %v5322_v31  ;;  %3819 = vmatprep.mubr.msk.f32.mxu1 (%p5335_p0), %vm488_vm2, %v5393_v42  ;;  %v5417_v52 = vld [vmem:[#allocation2 + $0x30] sm:$0xff] (%p5335_p0)  ;;  %v5423_v53 = vld [vmem:[#allocation2 + $0x38] sm:$0xff] (%p5335_p0) }
 0x90f   : > { %v5551_v54 = vmov %v5330_v12  ;;  %v4630_v0 = vpop.eup %4629  ;;  %v5332_v13 = vmul.f32 %v4620_v5, %v1813_v55   ;;  %v1816_v49 = vsub.f32 2.0, %v1800_v56  ;;  %v1799_v8 = vmul.f32 %v4628_v57, %v1767_v22  ;;  %v5433_v55 = vld [vmem:[#allocation2 + $0x50] sm:$0xff] (%p5335_p0)  ;;  %v5439_v56 = vld [vmem:[#allocation2 + $0x58] sm:$0xff] (%p5335_p0) }
 0x910   : > { %v4632_v9 = vpop.eup %4631  ;;  %v1822_v4 = vmul.f32 %v4622_v44, %v1806_v61   ;;  %v1805_v10 = vsub.f32 2.0, %v1789_v63  ;;  %v1792_v11 = vmul.f32 %v4630_v0, %v1760_v28  ;;  %v5566_v22 = vmov %v1820_v60  ;;  %v5449_v61 = vld [vmem:[#allocation2 + $0x70] sm:$0xff] (%p5335_p0)  ;;  %v5455_v63 = vld [vmem:[#allocation2 + $0x78] sm:$0xff] (%p5335_p0) }
 0x911   : > { %v5552_v26 = vmov %v5332_v13  ;;  %v1832_v27 = vmul.f32 %v4624_v51, %v1816_v49   ;;  %v1815_v14 = vsub.f32 2.0, %v1799_v8  ;;  %v1791_v16 = vmul.f32 %v4632_v9, %v1759_v30  ;;  %v5409_v51 = vld [vmem:[#allocation2 + $0x20] sm:$0xff] (%p5335_p0) }
 0x912   : > { %v1821_v29 = vmul.f32 %v4626_v62, %v1805_v10   ;;  %v1808_v12 = vsub.f32 2.0, %v1792_v11  ;;  %v5569_v25 = vmov %v5549_v6  ;;  %v4202_v28 = vpack.c.bf16 (%p5335_p0), %v5322_v31, %v5549_v6  ;;  %v5425_v62 = vld [vmem:[#allocation2 + $0x40] sm:$0xff] (%p5335_p0) }
 0x913   : > { %v4634_v18 = vpop.eup %4633  ;;  %v1831_v46 = vmul.f32 %v4628_v57, %v1815_v14   ;;  %v1807_v20 = vsub.f32 2.0, %v1791_v16  ;;  %v5554_v10 = vmov %v1832_v27  ;;  %v5558_v14 = vmov %v5548_v2  ;;  %v5390_v25 = vld [vmem:[#allocation4 + $0x8] sm:$0xff] (%p5335_p0)  ;;  %v5441_v57 = vld [vmem:[#allocation2 + $0x60] sm:$0xff] (%p5335_p0) }
 0x914   : > { %v4636_v21 = vpop.eup %4635  ;;  %v1824_v33 = vmul.f32 %v4630_v0, %v1808_v12   ;;  %v1794_v23 = vmul.f32 %v4634_v18, %v1762_v32  ;;  %v5556_v12 = vmov %v5551_v54  ;;  %v4206_v30 = vpack.c.bf16 (%p5335_p0), %v1820_v60, %v1819_v58  ;;  %4203 = vmatprep.subr.bf16.mxu0 (%p5335_p0), %v4202_v28  ;;  %v5415_v60 = vld [vmem:[#allocation2 + $0x28] sm:$0xff] (%p5335_p0) }
 0x915   : > { %v1823_v34 = vmul.f32 %v4632_v9, %v1807_v20   ;;  %v1793_v15 = vmul.f32 %v4636_v21, %v1761_v48  ;;  %v5555_v11 = vmov %v1831_v46  ;;  %v5564_v20 = vmov %v1822_v4  ;;  %509 = sbr.rel (!%p5335_p0) target bundleno = 299 (0x12b), region = 39  ;;  %4205 = vmatpush3.bf16.msra.mxu0 (%p5335_p0), %v4202_v28 }
 0x916   : > { %v1810_v13 = vsub.f32 2.0, %v1794_v23  ;;  %v5567_v23 = vmov %v1819_v58  ;;  %4207 = vmatprep.subr.bf16.mxu0 (%p5335_p0), %v4206_v30  ;;  %v4210_v43 = vpack.c.bf16 (%p5335_p0), %v1822_v4, %v1821_v29  ;;  %v4222_v22 = vpack.c.bf16 (%p5335_p0), %v5548_v2, %v5550_v35  ;;  %v5447_v58 = vld [vmem:[#allocation2 + $0x68] sm:$0xff] (%p5335_p0) }
 0x917   : > { %v1809_v19 = vsub.f32 2.0, %v1793_v15  ;;  %v5559_v15 = vmov %v5550_v35  ;;  %v4214_v41 = vpack.c.bf16 (%p5335_p0), %v1824_v33, %v1823_v34  ;;  %v4230_v24 = vpack.c.bf16 (%p5335_p0), %v1832_v27, %v1831_v46  ;;  %v5399_v35 = vld [vmem:[#allocation2 + $0x8] sm:$0xff] (%p5335_p0) }
 0x918   : > { %v1826_v37 = vmul.f32 %v4634_v18, %v1810_v13   ;;  %v5557_v13 = vmov %v5552_v26  ;;  %v5562_v18 = vmov %v1824_v33 }
 0x919   : > { %v1825_v38 = vmul.f32 %v4636_v21, %v1809_v19   ;;  %v5563_v19 = vmov %v1823_v34  ;;  %v5565_v21 = vmov %v1821_v29  ;;  %4209 = vmatpush3.bf16.msra.mxu0 (%p5335_p0), %v4206_v30 }
 0x91a   : > { %v5560_v16 = vmov %v1826_v37  ;;  %4211 = vmatprep.subr.bf16.mxu0 (%p5335_p0), %v4210_v43 }
 0x91b   : > { %v5561_v17 = vmov %v1825_v38  ;;  %v4218_v32 = vpack.c.bf16 (%p5335_p0), %v1826_v37, %v1825_v38 }
 0x91c   :  { %v4226_v17 = vpack.c.bf16 %v5551_v54, %v5552_v26  ;;  %v5431_v54 = vld [vmem:[#allocation2 + $0x48] sm:$0xff] }
 0x91d   :  { %4213 = vmatpush3.bf16.msra.mxu0 %v4210_v43 }
 0x91e   :  { %4215 = vmatprep.subr.bf16.mxu0 %v4214_v41 }
 0x921   :  { %4217 = vmatpush3.bf16.msra.mxu0 %v4214_v41 }
 0x922   :  { %4219 = vmatprep.subr.bf16.mxu0 %v4218_v32 }
 0x925   :  { %4221 = vmatpush3.bf16.msra.mxu0 %v4218_v32 }
 0x926   :  { %4223 = vmatprep.subr.bf16.mxu0 %v4222_v22 }
 0x929   :  { %4225 = vmatpush3.bf16.msra.mxu0 %v4222_v22 }
 0x92a   :  { %4227 = vmatprep.subr.bf16.mxu0 %v4226_v17 }
 0x92d   :  { %4229 = vmatpush3.bf16.msra.mxu0 %v4226_v17 }
 0x92e   :  { %4231 = vmatprep.subr.bf16.mxu0 %v4230_v24 }
 0x931   :  { %4233 = vmatpush3.bf16.msra.mxu0 %v4230_v24 }
 0x934   :  { %3813 = vmatmul.mubr.f32.vlgmr.msra.gmra.mrb[0].mxu0 %v5390_v25 }
 0x935   :  { %3882 = vmatprep.mubr.msk.f32.mxu0 %vm488_vm2, %v5393_v42 }
 0xa07   :  { %v3814_v31 = vpop.f32.mrb[0].mxu0 }
 0xa08   :  { %v1911_v45 = vmax.f32 %v3814_v31, 1e-30  ;;  %v1901_v47 = vpop.f32.mrb[1].mxu0 }
 0xa09   :  { %v1910_v48 = vmax.f32 %v1901_v47, 1e-30 }
 0xa0a   :  { %4650 = vrcp.f32 %v1911_v45 }
 0xa0b   :  { %4652 = vrcp.f32 %v1910_v48 }
 0xa14   :  { %v4651_v1 = vpop.eup %4650 }
 0xa15   :  { %v4653_v2 = vpop.eup %4652  ;;  %v1915_v3 = vmul.f32 %v4651_v1, %v1911_v45 }
 0xa16   :  { %v1914_v40 = vmul.f32 %v4653_v2, %v1910_v48 }
 0xa17   :  { %v1917_v5 = vsub.f32 2.0, %v1915_v3 }
 0xa18   :  { %v1916_v6 = vsub.f32 2.0, %v1914_v40 }
 0xa19   :  { %v1919_v59 = vmul.f32 %v4651_v1, %v1917_v5 }
 0xa1a   :  { %v1918_v7 = vmul.f32 %v4653_v2, %v1916_v6 }
 0xa1c   :  { %v4234_v44 = vpack.c.bf16 %v1919_v59, %v1918_v7 }
 0xa1e   :  { %4235 = vmatprep.subr.bf16.mxu1 %v4234_v44 }
 0xa1f   :  { %4237 = vmatpush3.bf16.msra.mxu1 %v4234_v44 }
 0xa22   :  { %3820 = vmatmul.mubr.msk.f32.vlgmr.msra.gmra.mrb[0].mxu1 %vm488_vm2, %v5399_v35 }
 0xa23   :  { %3822 = vmatprep.mubr.msk.f32.mxu1 %vm488_vm2, %v5401_v36 }
 0xa26   :  { %3823 = vmatmul.mubr.msk.f32.gmra.mrb[2].mxu1 %vm488_vm2, %v5407_v50 }
 0xa27   :  { %3825 = vmatprep.mubr.msk.f32.mxu1 %vm488_vm2, %v5409_v51 }
 0xa2a   :  { %3826 = vmatmul.mubr.msk.f32.gmra.mrb[4].mxu1 %vm488_vm2, %v5415_v60 }
 0xa2b   :  { %3828 = vmatprep.mubr.msk.f32.mxu1 %vm488_vm2, %v5417_v52 }
 0xa2e   :  { %3829 = vmatmul.mubr.msk.f32.gmra.mrb[6].mxu1 %vm488_vm2, %v5423_v53 }
 0xa2f   :  { %3831 = vmatprep.mubr.msk.f32.mxu1 %vm488_vm2, %v5425_v62 }
 0xa32   :  { %3832 = vmatmul.mubr.msk.f32.gmra.mrb[8].mxu1 %vm488_vm2, %v5431_v54 }
 0xa33   :  { %3834 = vmatprep.mubr.msk.f32.mxu1 %vm488_vm2, %v5433_v55 }
 0xa36   :  { %3835 = vmatmul.mubr.msk.f32.gmra.mrb[10].mxu1 %vm488_vm2, %v5439_v56 }
 0xa37   :  { %3837 = vmatprep.mubr.msk.f32.mxu1 %vm488_vm2, %v5441_v57 }
 0xa3a   :  { %3838 = vmatmul.mubr.msk.f32.gmra.mrb[12].mxu1 %vm488_vm2, %v5447_v58 }
 0xa3b   :  { %3840 = vmatprep.mubr.msk.f32.mxu1 %vm488_vm2, %v5449_v61 }
 0xa3e   :  { %3841 = vmatmul.mubr.msk.f32.gmra.mrb[14].mxu1 %vm488_vm2, %v5455_v63 }
 0xa3f   :  { %3875 = vmatprep.mubr.f32.mxu1 %v5383_v39 }
 0xaf5   :  { %v3821_v0 = vpop.f32.mrb[0].mxu1 }
 0xaf6   :  { %v2130_v26 = vmax.f32 %v3821_v0, 1e-30  ;;  %v2050_v49 = vpop.f32.mrb[1].mxu1 }
 0xaf7   :  { %v2129_v8 = vmax.f32 %v2050_v49, 1e-30 }
 0xaf8   :  { %4654 = vrcp.f32 %v2130_v26 }
 0xaf9   :  { %4656 = vrcp.f32 %v2129_v8  ;;  %v3824_v9 = vpop.f32.mrb[2].mxu1 }
 0xafa   :  { %v2132_v4 = vmax.f32 %v3824_v9, 1e-30  ;;  %v2060_v10 = vpop.f32.mrb[3].mxu1 }
 0xafb   :  { %v2131_v11 = vmax.f32 %v2060_v10, 1e-30 }
 0xafc   :  { %4658 = vrcp.f32 %v2132_v4 }
 0xafd   :  { %4660 = vrcp.f32 %v2131_v11  ;;  %v3827_v27 = vpop.f32.mrb[4].mxu1 }
 0xafe   :  { %v2134_v14 = vmax.f32 %v3827_v27, 1e-30  ;;  %v2070_v16 = vpop.f32.mrb[5].mxu1 }
 0xaff   :  { %v2133_v29 = vmax.f32 %v2070_v16, 1e-30 }
 0xb00   :  { %4662 = vrcp.f32 %v2134_v14 }
 0xb01   :  { %4664 = vrcp.f32 %v2133_v29  ;;  %v3830_v12 = vpop.f32.mrb[6].mxu1 }
 0xb02   :  { %v4655_v18 = vpop.eup %4654  ;;  %v2136_v46 = vmax.f32 %v3830_v12, 1e-30  ;;  %v2080_v20 = vpop.f32.mrb[7].mxu1 }
 0xb03   :  { %v4657_v21 = vpop.eup %4656  ;;  %v2162_v33 = vmul.f32 %v4655_v18, %v2130_v26  ;;  %v2135_v23 = vmax.f32 %v2080_v20, 1e-30 }
 0xb04   :  { %v2161_v34 = vmul.f32 %v4657_v21, %v2129_v8  ;;  %4666 = vrcp.f32 %v2136_v46 }
 0xb05   :  { %v2178_v15 = vsub.f32 2.0, %v2162_v33  ;;  %4668 = vrcp.f32 %v2135_v23  ;;  %v3833_v13 = vpop.f32.mrb[8].mxu1 }
 0xb06   :  { %v4659_v19 = vpop.eup %4658  ;;  %v2177_v37 = vsub.f32 2.0, %v2161_v34  ;;  %v2138_v38 = vmax.f32 %v3833_v13, 1e-30  ;;  %v2090_v28 = vpop.f32.mrb[9].mxu1 }
 0xb07   :  { %v4661_v30 = vpop.eup %4660  ;;  %v2194_v43 = vmul.f32 %v4655_v18, %v2178_v15  ;;  %v2164_v41 = vmul.f32 %v4659_v19, %v2132_v4  ;;  %v2137_v32 = vmax.f32 %v2090_v28, 1e-30 }
 0xb08   :  { %v2193_v22 = vmul.f32 %v4657_v21, %v2177_v37  ;;  %v2163_v17 = vmul.f32 %v4661_v30, %v2131_v11  ;;  %4670 = vrcp.f32 %v2138_v38 }
 0xb09   :  { %v2180_v24 = vsub.f32 2.0, %v2164_v41  ;;  %4672 = vrcp.f32 %v2137_v32  ;;  %v3836_v31 = vpop.f32.mrb[10].mxu1 }
 0xb0a   :  { %v4663_v45 = vpop.eup %4662  ;;  %v2179_v47 = vsub.f32 2.0, %v2163_v17  ;;  %v2140_v48 = vmax.f32 %v3836_v31, 1e-30  ;;  %v2100_v1 = vpop.f32.mrb[11].mxu1  ;;  %v4238_v2 = vpack.c.bf16 %v2194_v43, %v2193_v22 }
 0xb0b   :  { %v4665_v3 = vpop.eup %4664  ;;  %v2196_v40 = vmul.f32 %v4659_v19, %v2180_v24  ;;  %v2166_v5 = vmul.f32 %v4663_v45, %v2134_v14  ;;  %v2139_v6 = vmax.f32 %v2100_v1, 1e-30 }
 0xb0c   :  { %v2195_v59 = vmul.f32 %v4661_v30, %v2179_v47  ;;  %v2165_v7 = vmul.f32 %v4665_v3, %v2133_v29  ;;  %4674 = vrcp.f32 %v2140_v48  ;;  %4239 = vmatprep.subr.bf16.mxu1 %v4238_v2 }
 0xb0d   :  { %v2182_v44 = vsub.f32 2.0, %v2166_v5  ;;  %4676 = vrcp.f32 %v2139_v6  ;;  %v3839_v0 = vpop.f32.mrb[12].mxu1  ;;  %4241 = vmatpush3.bf16.msra.mxu1 %v4238_v2 }
 0xb0e   :  { %v4667_v26 = vpop.eup %4666  ;;  %v2181_v49 = vsub.f32 2.0, %v2165_v7  ;;  %v2142_v8 = vmax.f32 %v3839_v0, 1e-30  ;;  %v2110_v9 = vpop.f32.mrb[13].mxu1  ;;  %v4242_v4 = vpack.c.bf16 %v2196_v40, %v2195_v59 }
 0xb0f   :  { %v4669_v10 = vpop.eup %4668  ;;  %v2198_v11 = vmul.f32 %v4663_v45, %v2182_v44  ;;  %v2168_v27 = vmul.f32 %v4667_v26, %v2136_v46  ;;  %v2141_v16 = vmax.f32 %v2110_v9, 1e-30 }
 0xb10   :  { %v2197_v12 = vmul.f32 %v4665_v3, %v2181_v49  ;;  %v2167_v14 = vmul.f32 %v4669_v10, %v2135_v23  ;;  %4678 = vrcp.f32 %v2142_v8  ;;  %4243 = vmatprep.subr.bf16.mxu1 %v4242_v4 }
 0xb11   :  { %v2184_v29 = vsub.f32 2.0, %v2168_v27  ;;  %4680 = vrcp.f32 %v2141_v16  ;;  %v3842_v18 = vpop.f32.mrb[14].mxu1  ;;  %4245 = vmatpush3.bf16.msra.mxu1 %v4242_v4 }
 0xb12   :  { %v4671_v20 = vpop.eup %4670  ;;  %v2183_v21 = vsub.f32 2.0, %v2167_v14  ;;  %v2144_v33 = vmax.f32 %v3842_v18, 1e-30  ;;  %v2120_v34 = vpop.f32.mrb[15].mxu1  ;;  %v4246_v15 = vpack.c.bf16 %v2198_v11, %v2197_v12 }
 0xb13   :  { %v4673_v13 = vpop.eup %4672  ;;  %v2200_v19 = vmul.f32 %v4667_v26, %v2184_v29  ;;  %v2170_v37 = vmul.f32 %v4671_v20, %v2138_v38  ;;  %v2143_v28 = vmax.f32 %v2120_v34, 1e-30 }
 0xb14   :  { %v2199_v30 = vmul.f32 %v4669_v10, %v2183_v21  ;;  %v2169_v46 = vmul.f32 %v4673_v13, %v2137_v32  ;;  %4682 = vrcp.f32 %v2144_v33  ;;  %4247 = vmatprep.subr.bf16.mxu1 %v4246_v15 }
 0xb15   :  { %v2186_v23 = vsub.f32 2.0, %v2170_v37  ;;  %4684 = vrcp.f32 %v2143_v28  ;;  %4249 = vmatpush3.bf16.msra.mxu1 %v4246_v15 }
 0xb16   :  { %v4675_v43 = vpop.eup %4674  ;;  %v2185_v41 = vsub.f32 2.0, %v2169_v46  ;;  %v4250_v22 = vpack.c.bf16 %v2200_v19, %v2199_v30 }
 0xb17   :  { %v4677_v17 = vpop.eup %4676  ;;  %v2202_v24 = vmul.f32 %v4671_v20, %v2186_v23  ;;  %v2172_v31 = vmul.f32 %v4675_v43, %v2140_v48 }
 0xb18   :  { %v2201_v45 = vmul.f32 %v4673_v13, %v2185_v41  ;;  %v2171_v47 = vmul.f32 %v4677_v17, %v2139_v6  ;;  %4251 = vmatprep.subr.bf16.mxu1 %v4250_v22 }
 0xb19   :  { %v2188_v1 = vsub.f32 2.0, %v2172_v31  ;;  %4253 = vmatpush3.bf16.msra.mxu1 %v4250_v22 }
 0xb1a   :  { %v4679_v38 = vpop.eup %4678  ;;  %v2187_v2 = vsub.f32 2.0, %v2171_v47  ;;  %v4254_v3 = vpack.c.bf16 %v2202_v24, %v2201_v45 }
 0xb1b   :  { %v4681_v32 = vpop.eup %4680  ;;  %v2204_v40 = vmul.f32 %v4675_v43, %v2188_v1  ;;  %v2174_v5 = vmul.f32 %v4679_v38, %v2142_v8 }
 0xb1c   :  { %v2203_v59 = vmul.f32 %v4677_v17, %v2187_v2  ;;  %v2173_v7 = vmul.f32 %v4681_v32, %v2141_v16  ;;  %4255 = vmatprep.subr.bf16.mxu1 %v4254_v3 }
 0xb1d   :  { %v2190_v44 = vsub.f32 2.0, %v2174_v5  ;;  %4257 = vmatpush3.bf16.msra.mxu1 %v4254_v3 }
 0xb1e   :  { %v4683_v0 = vpop.eup %4682  ;;  %v2189_v26 = vsub.f32 2.0, %v2173_v7  ;;  %v4258_v49 = vpack.c.bf16 %v2204_v40, %v2203_v59 }
 0xb1f   :  { %v4685_v48 = vpop.eup %4684  ;;  %v2206_v9 = vmul.f32 %v4679_v38, %v2190_v44  ;;  %v2176_v6 = vmul.f32 %v4683_v0, %v2144_v33 }
 0xb20   :  { %v2205_v4 = vmul.f32 %v4681_v32, %v2189_v26  ;;  %v2175_v10 = vmul.f32 %v4685_v48, %v2143_v28  ;;  %4259 = vmatprep.subr.bf16.mxu1 %v4258_v49 }
 0xb21   :  { %v2192_v11 = vsub.f32 2.0, %v2176_v6  ;;  %4261 = vmatpush3.bf16.msra.mxu1 %v4258_v49 }
 0xb22   :  { %v2191_v27 = vsub.f32 2.0, %v2175_v10  ;;  %v4262_v12 = vpack.c.bf16 %v2206_v9, %v2205_v4 }
 0xb23   :  { %v2208_v14 = vmul.f32 %v4683_v0, %v2192_v11 }
 0xb24   :  { %v2207_v8 = vmul.f32 %v4685_v48, %v2191_v27  ;;  %4263 = vmatprep.subr.bf16.mxu1 %v4262_v12 }
 0xb25   :  { %4265 = vmatpush3.bf16.msra.mxu1 %v4262_v12 }
 0xb26   :  { %v4266_v16 = vpack.c.bf16 %v2208_v14, %v2207_v8 }
 0xb28   :  { %4267 = vmatprep.subr.bf16.mxu1 %v4266_v16 }
 0xb29   :  { %4269 = vmatpush3.bf16.msra.mxu1 %v4266_v16 }
 0xb2c   :  { %3876 = vmatmul.mubr.f32.vlgmr.msra.gmra.mrb[16].mxu1 %v5390_v25 }
 0xb2d   :  { %3945 = vmatprep.mubr.msk.f32.mxu1 %vm488_vm2, %v5393_v42 }
 0xbff   :  { %v3877_v29 = vpop.f32.mrb[16].mxu1 }
 0xc00   :  { %v2285_v18 = vmax.f32 %v3877_v29, 1e-30  ;;  %v2275_v20 = vpop.f32.mrb[17].mxu1 }
 0xc01   :  { %v2284_v21 = vmax.f32 %v2275_v20, 1e-30 }
 0xc02   :  { %4686 = vrcp.f32 %v2285_v18 }
 0xc03   :  { %4688 = vrcp.f32 %v2284_v21 }
 0xc0c   :  { %v4687_v33 = vpop.eup %4686 }
 0xc0d   :  { %v4689_v34 = vpop.eup %4688  ;;  %v2289_v15 = vmul.f32 %v4687_v33, %v2285_v18 }
 0xc0e   :  { %v2288_v13 = vmul.f32 %v4689_v34, %v2284_v21 }
 0xc0f   :  { %v2291_v19 = vsub.f32 2.0, %v2289_v15 }
 0xc10   :  { %v2290_v37 = vsub.f32 2.0, %v2288_v13 }
 0xc11   :  { %v2293_v28 = vmul.f32 %v4687_v33, %v2291_v19 }
 0xc12   :  { %v2292_v30 = vmul.f32 %v4689_v34, %v2290_v37 }
 0xc14   :  { %v4270_v46 = vpack.c.bf16 %v2293_v28, %v2292_v30 }
 0xc16   :  { %4271 = vmatprep.subr.bf16.mxu0 %v4270_v46 }
 0xc17   :  { %4273 = vmatpush3.bf16.msra.mxu0 %v4270_v46 }
 0xc1a   :  { %3883 = vmatmul.mubr.msk.f32.vlgmr.msra.gmra.mrb[2].mxu0 %vm488_vm2, %v5399_v35 }
 0xc1b   :  { %3885 = vmatprep.mubr.msk.f32.mxu0 %vm488_vm2, %v5401_v36 }
 0xc1e   :  { %3886 = vmatmul.mubr.msk.f32.gmra.mrb[4].mxu0 %vm488_vm2, %v5407_v50 }
 0xc1f   :  { %3888 = vmatprep.mubr.msk.f32.mxu0 %vm488_vm2, %v5409_v51 }
 0xc22   :  { %3889 = vmatmul.mubr.msk.f32.gmra.mrb[6].mxu0 %vm488_vm2, %v5415_v60 }
 0xc23   :  { %3891 = vmatprep.mubr.msk.f32.mxu0 %vm488_vm2, %v5417_v52 }
 0xc26   :  { %3892 = vmatmul.mubr.msk.f32.gmra.mrb[8].mxu0 %vm488_vm2, %v5423_v53 }
 0xc27   :  { %3894 = vmatprep.mubr.msk.f32.mxu0 %vm488_vm2, %v5425_v62 }
 0xc2a   :  { %3895 = vmatmul.mubr.msk.f32.gmra.mrb[10].mxu0 %vm488_vm2, %v5431_v54 }
 0xc2b   :  { %3897 = vmatprep.mubr.msk.f32.mxu0 %vm488_vm2, %v5433_v55 }
 0xc2e   :  { %3898 = vmatmul.mubr.msk.f32.gmra.mrb[12].mxu0 %vm488_vm2, %v5439_v56 }
 0xc2f   :  { %3900 = vmatprep.mubr.msk.f32.mxu0 %vm488_vm2, %v5441_v57 }
 0xc32   :  { %3901 = vmatmul.mubr.msk.f32.gmra.mrb[14].mxu0 %vm488_vm2, %v5447_v58 }
 0xc33   :  { %3903 = vmatprep.mubr.msk.f32.mxu0 %vm488_vm2, %v5449_v61 }
 0xc36   :  { %3904 = vmatmul.mubr.msk.f32.gmra.mrb[16].mxu0 %vm488_vm2, %v5455_v63 }
 0xc37   :  { %3938 = vmatprep.mubr.f32.mxu0 %v5383_v39 }
 0xced   :  { %v3884_v42 = vpop.f32.mrb[2].mxu0 }
 0xcee   :  { %v2440_v23 = vmax.f32 %v3884_v42, 1e-30  ;;  %v2360_v43 = vpop.f32.mrb[3].mxu0 }
 0xcef   :  { %v2439_v41 = vmax.f32 %v2360_v43, 1e-30 }
 0xcf0   :  { %4690 = vrcp.f32 %v2440_v23 }
 0xcf1   :  { %4692 = vrcp.f32 %v2439_v41  ;;  %v3887_v22 = vpop.f32.mrb[4].mxu0 }
 0xcf2   :  { %v2442_v17 = vmax.f32 %v3887_v22, 1e-30  ;;  %v2370_v24 = vpop.f32.mrb[5].mxu0 }
 0xcf3   :  { %v2441_v31 = vmax.f32 %v2370_v24, 1e-30 }
 0xcf4   :  { %4694 = vrcp.f32 %v2442_v17 }
 0xcf5   :  { %4696 = vrcp.f32 %v2441_v31  ;;  %v3890_v45 = vpop.f32.mrb[6].mxu0 }
 0xcf6   :  { %v2444_v47 = vmax.f32 %v3890_v45, 1e-30  ;;  %v2380_v1 = vpop.f32.mrb[7].mxu0 }
 0xcf7   :  { %v2443_v38 = vmax.f32 %v2380_v1, 1e-30 }
 0xcf8   :  { %4698 = vrcp.f32 %v2444_v47 }
 0xcf9   :  { %4700 = vrcp.f32 %v2443_v38  ;;  %v3893_v2 = vpop.f32.mrb[8].mxu0 }
 0xcfa   :  { %v4691_v3 = vpop.eup %4690  ;;  %v2446_v32 = vmax.f32 %v3893_v2, 1e-30  ;;  %v2390_v40 = vpop.f32.mrb[9].mxu0 }
 0xcfb   :  { %v4693_v5 = vpop.eup %4692  ;;  %v2472_v59 = vmul.f32 %v4691_v3, %v2440_v23  ;;  %v2445_v7 = vmax.f32 %v2390_v40, 1e-30 }
 0xcfc   :  { %v2471_v44 = vmul.f32 %v4693_v5, %v2439_v41  ;;  %4702 = vrcp.f32 %v2446_v32 }
 0xcfd   :  { %v2488_v0 = vsub.f32 2.0, %v2472_v59  ;;  %4704 = vrcp.f32 %v2445_v7  ;;  %v3896_v26 = vpop.f32.mrb[10].mxu0 }
 0xcfe   :  { %v4695_v49 = vpop.eup %4694  ;;  %v2487_v48 = vsub.f32 2.0, %v2471_v44  ;;  %v2448_v9 = vmax.f32 %v3896_v26, 1e-30  ;;  %v2400_v6 = vpop.f32.mrb[11].mxu0 }
 0xcff   :  { %v4697_v4 = vpop.eup %4696  ;;  %v2504_v10 = vmul.f32 %v4691_v3, %v2488_v0  ;;  %v2474_v11 = vmul.f32 %v4695_v49, %v2442_v17  ;;  %v2447_v27 = vmax.f32 %v2400_v6, 1e-30 }
 0xd00   :  { %v2503_v12 = vmul.f32 %v4693_v5, %v2487_v48  ;;  %v2473_v14 = vmul.f32 %v4697_v4, %v2441_v31  ;;  %4706 = vrcp.f32 %v2448_v9 }
 0xd01   :  { %v2490_v8 = vsub.f32 2.0, %v2474_v11  ;;  %4708 = vrcp.f32 %v2447_v27  ;;  %v3899_v16 = vpop.f32.mrb[12].mxu0 }
 0xd02   :  { %v4699_v29 = vpop.eup %4698  ;;  %v2489_v18 = vsub.f32 2.0, %v2473_v14  ;;  %v2450_v20 = vmax.f32 %v3899_v16, 1e-30  ;;  %v2410_v21 = vpop.f32.mrb[13].mxu0  ;;  %v4274_v33 = vpack.c.bf16 %v2504_v10, %v2503_v12 }
 0xd03   :  { %v4701_v34 = vpop.eup %4700  ;;  %v2506_v15 = vmul.f32 %v4695_v49, %v2490_v8  ;;  %v2476_v13 = vmul.f32 %v4699_v29, %v2444_v47  ;;  %v2449_v19 = vmax.f32 %v2410_v21, 1e-30 }
 0xd04   :  { %v2505_v37 = vmul.f32 %v4697_v4, %v2489_v18  ;;  %v2475_v28 = vmul.f32 %v4701_v34, %v2443_v38  ;;  %4710 = vrcp.f32 %v2450_v20  ;;  %4275 = vmatprep.subr.bf16.mxu0 %v4274_v33 }
 0xd05   :  { %v2492_v30 = vsub.f32 2.0, %v2476_v13  ;;  %4712 = vrcp.f32 %v2449_v19  ;;  %v3902_v46 = vpop.f32.mrb[14].mxu0  ;;  %4277 = vmatpush3.bf16.msra.mxu0 %v4274_v33 }
 0xd06   :  { %v4703_v42 = vpop.eup %4702  ;;  %v2491_v23 = vsub.f32 2.0, %v2475_v28  ;;  %v2452_v43 = vmax.f32 %v3902_v46, 1e-30  ;;  %v2420_v41 = vpop.f32.mrb[15].mxu0  ;;  %v4278_v22 = vpack.c.bf16 %v2506_v15, %v2505_v37 }
 0xd07   :  { %v4705_v17 = vpop.eup %4704  ;;  %v2508_v24 = vmul.f32 %v4699_v29, %v2492_v30  ;;  %v2478_v31 = vmul.f32 %v4703_v42, %v2446_v32  ;;  %v2451_v45 = vmax.f32 %v2420_v41, 1e-30 }
 0xd08   :  { %v2507_v1 = vmul.f32 %v4701_v34, %v2491_v23  ;;  %v2477_v47 = vmul.f32 %v4705_v17, %v2445_v7  ;;  %4714 = vrcp.f32 %v2452_v43  ;;  %4279 = vmatprep.subr.bf16.mxu0 %v4278_v22 }
 0xd09   :  { %v2494_v38 = vsub.f32 2.0, %v2478_v31  ;;  %4716 = vrcp.f32 %v2451_v45  ;;  %v3905_v2 = vpop.f32.mrb[16].mxu0  ;;  %4281 = vmatpush3.bf16.msra.mxu0 %v4278_v22 }
 0xd0a   :  { %v4707_v3 = vpop.eup %4706  ;;  %v2493_v40 = vsub.f32 2.0, %v2477_v47  ;;  %v2454_v5 = vmax.f32 %v3905_v2, 1e-30  ;;  %v2430_v59 = vpop.f32.mrb[17].mxu0  ;;  %v4282_v44 = vpack.c.bf16 %v2508_v24, %v2507_v1 }
 0xd0b   :  { %v4709_v0 = vpop.eup %4708  ;;  %v2510_v26 = vmul.f32 %v4703_v42, %v2494_v38  ;;  %v2480_v49 = vmul.f32 %v4707_v3, %v2448_v9  ;;  %v2453_v48 = vmax.f32 %v2430_v59, 1e-30 }
 0xd0c   :  { %v2509_v6 = vmul.f32 %v4705_v17, %v2493_v40  ;;  %v2479_v32 = vmul.f32 %v4709_v0, %v2447_v27  ;;  %4718 = vrcp.f32 %v2454_v5  ;;  %4283 = vmatprep.subr.bf16.mxu0 %v4282_v44 }
 0xd0d   :  { %v2496_v7 = vsub.f32 2.0, %v2480_v49  ;;  %4720 = vrcp.f32 %v2453_v48  ;;  %4285 = vmatpush3.bf16.msra.mxu0 %v4282_v44 }
 0xd0e   :  { %v4711_v4 = vpop.eup %4710  ;;  %v2495_v10 = vsub.f32 2.0, %v2479_v32  ;;  %v4286_v11 = vpack.c.bf16 %v2510_v26, %v2509_v6 }
 0xd0f   :  { %v4713_v12 = vpop.eup %4712  ;;  %v2512_v14 = vmul.f32 %v4707_v3, %v2496_v7  ;;  %v2482_v8 = vmul.f32 %v4711_v4, %v2450_v20 }
 0xd10   :  { %v2511_v16 = vmul.f32 %v4709_v0, %v2495_v10  ;;  %v2481_v29 = vmul.f32 %v4713_v12, %v2449_v19  ;;  %4287 = vmatprep.subr.bf16.mxu0 %v4286_v11 }
 0xd11   :  { %v2498_v18 = vsub.f32 2.0, %v2482_v8  ;;  %4289 = vmatpush3.bf16.msra.mxu0 %v4286_v11 }
 0xd12   :  { %v4715_v9 = vpop.eup %4714  ;;  %v2497_v21 = vsub.f32 2.0, %v2481_v29  ;;  %v4290_v33 = vpack.c.bf16 %v2512_v14, %v2511_v16 }
 0xd13   :  { %v4717_v27 = vpop.eup %4716  ;;  %v2514_v34 = vmul.f32 %v4711_v4, %v2498_v18  ;;  %v2484_v15 = vmul.f32 %v4715_v9, %v2452_v43 }
 0xd14   :  { %v2513_v13 = vmul.f32 %v4713_v12, %v2497_v21  ;;  %v2483_v37 = vmul.f32 %v4717_v27, %v2451_v45  ;;  %4291 = vmatprep.subr.bf16.mxu0 %v4290_v33 }
 0xd15   :  { %v2500_v28 = vsub.f32 2.0, %v2484_v15  ;;  %4293 = vmatpush3.bf16.msra.mxu0 %v4290_v33 }
 0xd16   :  { %v4719_v30 = vpop.eup %4718  ;;  %v2499_v46 = vsub.f32 2.0, %v2483_v37  ;;  %v4294_v42 = vpack.c.bf16 %v2514_v34, %v2513_v13 }
 0xd17   :  { %v4721_v20 = vpop.eup %4720  ;;  %v2516_v23 = vmul.f32 %v4715_v9, %v2500_v28  ;;  %v2486_v19 = vmul.f32 %v4719_v30, %v2454_v5 }
 0xd18   :  { %v2515_v41 = vmul.f32 %v4717_v27, %v2499_v46  ;;  %v2485_v22 = vmul.f32 %v4721_v20, %v2453_v48  ;;  %4295 = vmatprep.subr.bf16.mxu0 %v4294_v42 }
 0xd19   :  { %v2502_v17 = vsub.f32 2.0, %v2486_v19  ;;  %4297 = vmatpush3.bf16.msra.mxu0 %v4294_v42 }
 0xd1a   :  { %v2501_v24 = vsub.f32 2.0, %v2485_v22  ;;  %v4298_v31 = vpack.c.bf16 %v2516_v23, %v2515_v41 }
 0xd1b   :  { %v2518_v1 = vmul.f32 %v4719_v30, %v2502_v17 }
 0xd1c   :  { %v2517_v43 = vmul.f32 %v4721_v20, %v2501_v24  ;;  %4299 = vmatprep.subr.bf16.mxu0 %v4298_v31 }
 0xd1d   :  { %4301 = vmatpush3.bf16.msra.mxu0 %v4298_v31 }
 0xd1e   :  { %v4302_v45 = vpack.c.bf16 %v2518_v1, %v2517_v43 }
 0xd20   :  { %4303 = vmatprep.subr.bf16.mxu0 %v4302_v45 }
 0xd21   :  { %4305 = vmatpush3.bf16.msra.mxu0 %v4302_v45 }
 0xd24   :  { %3939 = vmatmul.mubr.f32.vlgmr.msra.gmra.mrb[18].mxu0 %v5390_v25 }
 0xdf7   :  { %v3940_v47 = vpop.f32.mrb[18].mxu0 }
 0xdf8   :  { %v2595_v38 = vmax.f32 %v3940_v47, 1e-30  ;;  %v2585_v2 = vpop.f32.mrb[19].mxu0 }
 0xdf9   :  { %v2594_v3 = vmax.f32 %v2585_v2, 1e-30 }
 0xdfa   :  { %4722 = vrcp.f32 %v2595_v38 }
 0xdfb   :  { %4724 = vrcp.f32 %v2594_v3 }
 0xe04   :  { %v4723_v40 = vpop.eup %4722 }
 0xe05   :  { %v4725_v5 = vpop.eup %4724  ;;  %v2599_v59 = vmul.f32 %v4723_v40, %v2595_v38 }
 0xe06   :  { %v2598_v44 = vmul.f32 %v4725_v5, %v2594_v3 }
 0xe07   :  { %v2601_v0 = vsub.f32 2.0, %v2599_v59 }
 0xe08   :  { %v2600_v26 = vsub.f32 2.0, %v2598_v44 }
 0xe09   :  { %v2603_v49 = vmul.f32 %v4723_v40, %v2601_v0 }
 0xe0a   :  { %v2602_v48 = vmul.f32 %v4725_v5, %v2600_v26 }
 0xe0c   :  { %v4306_v6 = vpack.c.bf16 %v2603_v49, %v2602_v48 }
 0xe0e   :  { %4307 = vmatprep.subr.bf16.mxu1 %v4306_v6 }
 0xe0f   :  { %4309 = vmatpush3.bf16.msra.mxu1 %v4306_v6 }
 0xe12   :  { %3946 = vmatmul.mubr.msk.f32.vlgmr.msra.gmra.mrb[18].mxu1 %vm488_vm2, %v5399_v35 }
 0xe13   :  { %3948 = vmatprep.mubr.msk.f32.mxu1 %vm488_vm2, %v5401_v36 }
 0xe16   :  { %3949 = vmatmul.mubr.msk.f32.gmra.mrb[20].mxu1 %vm488_vm2, %v5407_v50 }
 0xe17   :  { %3951 = vmatprep.mubr.msk.f32.mxu1 %vm488_vm2, %v5409_v51 }
 0xe1a   :  { %3952 = vmatmul.mubr.msk.f32.gmra.mrb[22].mxu1 %vm488_vm2, %v5415_v60 }
 0xe1b   :  { %3954 = vmatprep.mubr.msk.f32.mxu1 %vm488_vm2, %v5417_v52 }
 0xe1e   :  { %3955 = vmatmul.mubr.msk.f32.gmra.mrb[24].mxu1 %vm488_vm2, %v5423_v53 }
 0xe1f   :  { %3957 = vmatprep.mubr.msk.f32.mxu1 %vm488_vm2, %v5425_v62 }
 0xe22   :  { %3958 = vmatmul.mubr.msk.f32.gmra.mrb[26].mxu1 %vm488_vm2, %v5431_v54 }
 0xe23   :  { %3960 = vmatprep.mubr.msk.f32.mxu1 %vm488_vm2, %v5433_v55 }
 0xe26   :  { %3961 = vmatmul.mubr.msk.f32.gmra.mrb[28].mxu1 %vm488_vm2, %v5439_v56 }
 0xe27   :  { %3963 = vmatprep.mubr.msk.f32.mxu1 %vm488_vm2, %v5441_v57 }
 0xe2a   :  { %3964 = vmatmul.mubr.msk.f32.gmra.mrb[30].mxu1 %vm488_vm2, %v5447_v58 }
 0xe2b   :  { %3966 = vmatprep.mubr.msk.f32.mxu1 %vm488_vm2, %v5449_v61 }
 0xe2e   :  { %3967 = vmatmul.mubr.msk.f32.gmra.mrb[32].mxu1 %vm488_vm2, %v5455_v63 }
 0xe2f   :  { %4001 = vmatprep.mubr.f32.mxu1 %v5383_v39 }
 0xee5   :  { %v3947_v25 = vpop.f32.mrb[18].mxu1 }
 0xee6   :  { %v2750_v35 = vmax.f32 %v3947_v25, 1e-30  ;;  %v2670_v36 = vpop.f32.mrb[19].mxu1 }
 0xee7   :  { %v2749_v50 = vmax.f32 %v2670_v36, 1e-30 }
 0xee8   :  { %4726 = vrcp.f32 %v2750_v35 }
 0xee9   :  { %4728 = vrcp.f32 %v2749_v50  ;;  %v3950_v51 = vpop.f32.mrb[20].mxu1 }
 0xeea   :  { %v2752_v60 = vmax.f32 %v3950_v51, 1e-30  ;;  %v2680_v52 = vpop.f32.mrb[21].mxu1 }
 0xeeb   :  { %v2751_v53 = vmax.f32 %v2680_v52, 1e-30 }
 0xeec   :  { %4730 = vrcp.f32 %v2752_v60 }
 0xeed   :  { %4732 = vrcp.f32 %v2751_v53  ;;  %v3953_v62 = vpop.f32.mrb[22].mxu1 }
 0xeee   :  { %v2754_v54 = vmax.f32 %v3953_v62, 1e-30  ;;  %v2690_v55 = vpop.f32.mrb[23].mxu1 }
 0xeef   :  { %v2753_v56 = vmax.f32 %v2690_v55, 1e-30 }
 0xef0   :  { %4734 = vrcp.f32 %v2754_v54 }
 0xef1   :  { %4736 = vrcp.f32 %v2753_v56  ;;  %v3956_v57 = vpop.f32.mrb[24].mxu1 }
 0xef2   :  { %v4727_v39 = vpop.eup %4726  ;;  %v2756_v58 = vmax.f32 %v3956_v57, 1e-30  ;;  %v2700_v61 = vpop.f32.mrb[25].mxu1 }
 0xef3   :  { %v4729_v63 = vpop.eup %4728  ;;  %v2782_v32 = vmul.f32 %v4727_v39, %v2750_v35  ;;  %v2755_v7 = vmax.f32 %v2700_v61, 1e-30 }
 0xef4   :  { %v2781_v4 = vmul.f32 %v4729_v63, %v2749_v50  ;;  %4738 = vrcp.f32 %v2756_v58 }
 0xef5   :  { %v2798_v10 = vsub.f32 2.0, %v2782_v32  ;;  %4740 = vrcp.f32 %v2755_v7  ;;  %v3959_v11 = vpop.f32.mrb[26].mxu1 }
 0xef6   :  { %v4731_v12 = vpop.eup %4730  ;;  %v2797_v14 = vsub.f32 2.0, %v2781_v4  ;;  %v2758_v8 = vmax.f32 %v3959_v11, 1e-30  ;;  %v2710_v16 = vpop.f32.mrb[27].mxu1 }
 0xef7   :  { %v4733_v29 = vpop.eup %4732  ;;  %v2814_v18 = vmul.f32 %v4727_v39, %v2798_v10  ;;  %v2784_v9 = vmul.f32 %v4731_v12, %v2752_v60  ;;  %v2757_v21 = vmax.f32 %v2710_v16, 1e-30 }
 0xef8   :  { %v2813_v33 = vmul.f32 %v4729_v63, %v2797_v14  ;;  %v2783_v27 = vmul.f32 %v4733_v29, %v2751_v53  ;;  %4742 = vrcp.f32 %v2758_v8 }
 0xef9   :  { %v2800_v34 = vsub.f32 2.0, %v2784_v9  ;;  %4744 = vrcp.f32 %v2757_v21  ;;  %v3962_v15 = vpop.f32.mrb[28].mxu1 }
 0xefa   :  { %v4735_v13 = vpop.eup %4734  ;;  %v2799_v37 = vsub.f32 2.0, %v2783_v27  ;;  %v2760_v28 = vmax.f32 %v3962_v15, 1e-30  ;;  %v2720_v30 = vpop.f32.mrb[29].mxu1  ;;  %v4310_v46 = vpack.c.bf16 %v2814_v18, %v2813_v33 }
 0xefb   :  { %v4737_v42 = vpop.eup %4736  ;;  %v2816_v20 = vmul.f32 %v4731_v12, %v2800_v34  ;;  %v2786_v23 = vmul.f32 %v4735_v13, %v2754_v54  ;;  %v2759_v19 = vmax.f32 %v2720_v30, 1e-30 }
 0xefc   :  { %v2815_v41 = vmul.f32 %v4733_v29, %v2799_v37  ;;  %v2785_v22 = vmul.f32 %v4737_v42, %v2753_v56  ;;  %4746 = vrcp.f32 %v2760_v28  ;;  %4311 = vmatprep.subr.bf16.mxu1 %v4310_v46 }
 0xefd   :  { %v2802_v17 = vsub.f32 2.0, %v2786_v23  ;;  %4748 = vrcp.f32 %v2759_v19  ;;  %v3965_v24 = vpop.f32.mrb[30].mxu1  ;;  %4313 = vmatpush3.bf16.msra.mxu1 %v4310_v46  ;;  %v4927_v23 = vmov 0  }
 0xefe   :  { %v4739_v31 = vpop.eup %4738  ;;  %v2801_v1 = vsub.f32 2.0, %v2785_v22  ;;  %v2762_v43 = vmax.f32 %v3965_v24, 1e-30  ;;  %v2730_v45 = vpop.f32.mrb[31].mxu1  ;;  %v4314_v47 = vpack.c.bf16 %v2816_v20, %v2815_v41  ;;  %v4764_v20 = vld [vmem:[#allocation4 + $0x8] sm:$0xff]  ;;  %4649 = vset.pattern.permute.xlu0 %v4927_v23 }
 0xeff   :  { %v4741_v38 = vpop.eup %4740  ;;  %v2818_v2 = vmul.f32 %v4735_v13, %v2802_v17  ;;  %v2788_v3 = vmul.f32 %v4739_v31, %v2756_v58  ;;  %v2761_v40 = vmax.f32 %v2730_v45, 1e-30 }
 0xf00   :  { %v2817_v5 = vmul.f32 %v4737_v42, %v2801_v1  ;;  %v2787_v59 = vmul.f32 %v4741_v38, %v2755_v7  ;;  %4750 = vrcp.f32 %v2762_v43  ;;  %4315 = vmatprep.subr.bf16.mxu1 %v4314_v47 }
 0xf01   :  { %v2804_v44 = vsub.f32 2.0, %v2788_v3  ;;  %4752 = vrcp.f32 %v2761_v40  ;;  %v3968_v0 = vpop.f32.mrb[32].mxu1  ;;  %4317 = vmatpush3.bf16.msra.mxu1 %v4314_v47 }
 0xf02   :  { %v4743_v26 = vpop.eup %4742  ;;  %v2803_v49 = vsub.f32 2.0, %v2787_v59  ;;  %v2764_v48 = vmax.f32 %v3968_v0, 1e-30  ;;  %v2740_v6 = vpop.f32.mrb[33].mxu1  ;;  %v4318_v25 = vpack.c.bf16 %v2818_v2, %v2817_v5  ;;  %v4765_v5 = vld [vmem:[#allocation4] sm:$0xff] }
 0xf03   :  { %v4745_v35 = vpop.eup %4744  ;;  %v2820_v36 = vmul.f32 %v4739_v31, %v2804_v44  ;;  %v2790_v50 = vmul.f32 %v4743_v26, %v2758_v8  ;;  %v2763_v51 = vmax.f32 %v2740_v6, 1e-30 }
 0xf04   :  { %v2819_v60 = vmul.f32 %v4741_v38, %v2803_v49  ;;  %v2789_v52 = vmul.f32 %v4745_v35, %v2757_v21  ;;  %4754 = vrcp.f32 %v2764_v48  ;;  %4319 = vmatprep.subr.bf16.mxu1 %v4318_v25 }
 0xf05   :  { %v2806_v53 = vsub.f32 2.0, %v2790_v50  ;;  %4756 = vrcp.f32 %v2763_v51  ;;  %4321 = vmatpush3.bf16.msra.mxu1 %v4318_v25 }
 0xf06   :  { %v4747_v62 = vpop.eup %4746  ;;  %v2805_v54 = vsub.f32 2.0, %v2789_v52  ;;  %v4322_v55 = vpack.c.bf16 %v2820_v36, %v2819_v60 }
 0xf07   :  { %v4749_v56 = vpop.eup %4748  ;;  %v2822_v57 = vmul.f32 %v4743_v26, %v2806_v53  ;;  %v2792_v39 = vmul.f32 %v4747_v62, %v2760_v28 }
 0xf08   :  { %v2821_v58 = vmul.f32 %v4745_v35, %v2805_v54  ;;  %v2791_v61 = vmul.f32 %v4749_v56, %v2759_v19  ;;  %4323 = vmatprep.subr.bf16.mxu1 %v4322_v55 }
 0xf09   :  { %v2808_v63 = vsub.f32 2.0, %v2792_v39  ;;  %4325 = vmatpush3.bf16.msra.mxu1 %v4322_v55 }
 0xf0a   :  { %v4751_v32 = vpop.eup %4750  ;;  %v2807_v7 = vsub.f32 2.0, %v2791_v61  ;;  %v4326_v4 = vpack.c.bf16 %v2822_v57, %v2821_v58 }
 0xf0b   :  { %v4753_v10 = vpop.eup %4752  ;;  %v2824_v11 = vmul.f32 %v4747_v62, %v2808_v63  ;;  %v2794_v12 = vmul.f32 %v4751_v32, %v2762_v43 }
 0xf0c   :  { %v2823_v14 = vmul.f32 %v4749_v56, %v2807_v7  ;;  %v2793_v8 = vmul.f32 %v4753_v10, %v2761_v40  ;;  %4327 = vmatprep.subr.bf16.mxu1 %v4326_v4 }
 0xf0d   :  { %v2810_v16 = vsub.f32 2.0, %v2794_v12  ;;  %4329 = vmatpush3.bf16.msra.mxu1 %v4326_v4 }
 0xf0e   :  { %v4755_v29 = vpop.eup %4754  ;;  %v2809_v18 = vsub.f32 2.0, %v2793_v8  ;;  %v4330_v9 = vpack.c.bf16 %v2824_v11, %v2823_v14 }
 0xf0f   :  { %v4757_v21 = vpop.eup %4756  ;;  %v2826_v33 = vmul.f32 %v4751_v32, %v2810_v16  ;;  %v2796_v27 = vmul.f32 %v4755_v29, %v2764_v48 }
 0xf10   :  { %v2825_v34 = vmul.f32 %v4753_v10, %v2809_v18  ;;  %v2795_v15 = vmul.f32 %v4757_v21, %v2763_v51  ;;  %4331 = vmatprep.subr.bf16.mxu1 %v4330_v9 }
 0xf11   :  { %v2812_v13 = vsub.f32 2.0, %v2796_v27  ;;  %4333 = vmatpush3.bf16.msra.mxu1 %v4330_v9 }
 0xf12   :  { %v2811_v37 = vsub.f32 2.0, %v2795_v15  ;;  %v4334_v28 = vpack.c.bf16 %v2826_v33, %v2825_v34 }
 0xf13   :  { %v2828_v30 = vmul.f32 %v4755_v29, %v2812_v13 }
 0xf14   :  { %v2827_v46 = vmul.f32 %v4757_v21, %v2811_v37  ;;  %4335 = vmatprep.subr.bf16.mxu1 %v4334_v28 }
 0xf15   :  { %4337 = vmatpush3.bf16.msra.mxu1 %v4334_v28 }
 0xf16   :  { %v4338_v42 = vpack.c.bf16 %v2828_v30, %v2827_v46 }
 0xf18   :  { %4339 = vmatprep.subr.bf16.mxu1 %v4338_v42 }
 0xf19   :  { %4341 = vmatpush3.bf16.msra.mxu1 %v4338_v42 }
 0xf1c   :  { %4002 = vmatmul.mubr.f32.vlgmr.msra.gmra.mrb[34].mxu1 %v4764_v20 }
 0xfef   :  { %v4003_v19 = vpop.f32.mrb[34].mxu1 }
 0xff0   :  { %v2905_v41 = vmax.f32 %v4003_v19, 1e-30  ;;  %v2895_v22 = vpop.f32.mrb[35].mxu1 }
 0xff1   :  { %v2904_v17 = vmax.f32 %v2895_v22, 1e-30 }
 0xff2   :  { %4758 = vrcp.f32 %v2905_v41 }
 0xff3   :  { %4760 = vrcp.f32 %v2904_v17 }
 0xffc   :  { %v4759_v24 = vpop.eup %4758 }
 0xffd   :  { %v4761_v31 = vpop.eup %4760  ;;  %v2909_v1 = vmul.f32 %v4759_v24, %v2905_v41 }
 0xffe   :  { %v2908_v43 = vmul.f32 %v4761_v31, %v2904_v17 }
 0xfff   :  { %v2911_v47 = vsub.f32 2.0, %v2909_v1 }
0x1000   :  { %v2910_v45 = vsub.f32 2.0, %v2908_v43 }
0x1001   :  { %v2913_v2 = vmul.f32 %v4759_v24, %v2911_v47 }
0x1002   :  { %v2912_v38 = vmul.f32 %v4761_v31, %v2910_v45 }
0x1004   :  { %2916 = vperm.xlu0 %4649, %v2912_v38  }
0x1008   :  { %2921 = vperm.xlu0 %4649, %v2913_v2  }
0x1083   :  { %v2917_v3 = vpop.permute.xlu0 %2916 }
0x1084   :  { %v2924_v59 = vmul.f32 %v4765_v5, %v2917_v3 }
0x1087   :  { %v2922_v40 = vpop.permute.xlu0 %2921 }
0x1088   :  { %v2925_v44 = vmul.f32 %v4764_v20, %v2922_v40 }
0x108a   :  { %v2926_v0 = vadd.f32 %v2925_v44, %v2924_v59 }
0x108c   :  { %v2927_v26 = vrot.slane %v2926_v0, 4 }
0x108e   :  { %v2928_v49 = vadd.f32 %v2927_v26, %v2926_v0 }
0x1090   :  { %v2929_v48 = vrot.slane %v2928_v49, 2 }
0x1092   :  { %v2930_v6 = vadd.f32 %v2929_v48, %v2928_v49 }
0x1094   :  { %v2931_v25 = vrot.slane %v2930_v6, 1 }
0x1096   :  { %v2932_v35 = vadd.f32 %v2931_v25, %v2930_v6 }
0x1098   :  { %v2933_v36 = vmax.f32 %v2932_v35, 1e-30 }
0x109a   :  { %4762 = vrcp.f32 %v2933_v36 }
0x10a4   :  { %v4763_v50 = vpop.eup %4762 }
0x10a5   :  { %v2935_v51 = vmul.f32 %v4763_v50, %v2933_v36 }
0x10a7   :  { %v2936_v60 = vsub.f32 2.0, %v2935_v51 }
0x10a9   :  { %v2937_v52 = vmul.f32 %v4763_v50, %v2936_v60 }
0x10ab   :  { %v2938_v53 = vmul.f32 %v2937_v52, %v2924_v59  ;;  %v2939_v62 = vmul.f32 %v2937_v52, %v2925_v44 }
0x10ad   :  { %2941 = vst [vmem:[#allocation4 + $0x8] sm:$0xff] %v2939_v62  ;;  %2940 = vst [vmem:[#allocation4] sm:$0xff] %v2938_v53 }
0x10ae   :  { %4777 = shalt.err (!%p4774_p5)
}
0x10af   :  { %s4778_s27 = scalar_lea.hbm %s5541_s3, 256 }
0x10b0   :  { %p4779_p6 = scmp.ne.s32.totalorder %s5541_s3, %s4778_s27  ;;  %p4782_p7 = scmp.lt.u32.totalorder %s4778_s27, %s5541_s3 }
0x10b2   :  { %p4784_p8 = pnand %p4782_p7, %p4779_p6 }
0x10b4   :  { %4787 = shalt.err (!%p4784_p8)
}
0x10b5   :  { %s4929_s4 = smov 128   ;;  %s4930_s5 = smov 8  }
0x10b6   :  { %2953 = dma.vmem_to_hbm [thread:$0]  %s2948_s23, 256, %s5541_s3, [#allocation5], %s4929_s4, %s4929_s4, %s4930_s5  }
0x10b7   :  { %4856 = dma.done.wait [#allocation5], 256  }
0x10b8   :  { %4857 = vsyncadd [#allocation5], 4294967040 }
0x10b9   :  { %2957 = vsyncpa [#allocation5], 1 }

</bundles_post_ra>
